<compile_context>
chip_gen: v7x
topology: tpu7x:2x2x1
jax: 0.10.0
libtpu: 0.0.40
codegen_flags: <defaults>
</compile_context>

<pallas_src>
import functools

import numpy as np
import jax
import jax.numpy as jnp
from jax.experimental import pallas as pl
from jax.experimental.pallas import tpu as pltpu

_LN_EPS = 1e-5  # torch.nn.LayerNorm default eps


# ----------------------------------------------------------------------------
# Fused R_NEM kernel (one grid step == one recurrent timestep)
# ----------------------------------------------------------------------------

def _rnem_kernel(
    x_ref, state0_ref, sel_f_ref, sel_c_ref, agg_ref,
    enc_w, enc_b, enc_g, enc_be,
    core_wf, core_wc, core_b, core_g, core_be,
    ctx_w, ctx_b, ctx_g, ctx_be,
    att1_w, att1_b, att1_g, att1_be,
    att2_w, att2_b,
    out_ws, out_we, out_wx, out_b,
    o_ref,
    state_sc,
):
    f32 = jnp.float32
    bf16 = jnp.bfloat16
    t = pl.program_id(0)

    # Initialize the recurrent carry from the input state on the first step.
    @pl.when(t == 0)
    def _():
        state_sc[...] = state0_ref[...]

    def ln(v, g, bb):
        mu = jnp.mean(v, axis=-1, keepdims=True)
        var = jnp.mean(jnp.square(v - mu), axis=-1, keepdims=True)
        return (v - mu) * jax.lax.rsqrt(var + _LN_EPS) * g[...] + bb[...]

    x = x_ref[0].astype(bf16)          # [BK, 512]
    s = state_sc[...].astype(bf16)     # [BK, H]

    # encoder: Linear -> LayerNorm -> ReLU   (matmuls bf16, epilogue f32)
    state1 = jnp.maximum(
        ln(jnp.dot(s, enc_w[...], preferred_element_type=f32) + enc_b[...],
           enc_g, enc_be),
        0.0)                                                        # [BK, H] f32
    state1_b = state1.astype(bf16)

    # focus / context pair rows via 0/1 selection matmuls (lane dense, MXU)
    fs = jnp.dot(sel_f_ref[...], state1_b, preferred_element_type=f32).astype(bf16)
    cs = jnp.dot(sel_c_ref[...], state1_b, preferred_element_type=f32).astype(bf16)

    # core: Linear(2H->H) on concat([fs, cs]) == fs@Wf + cs@Wc, then LN, ReLU
    core = jnp.maximum(
        ln(jnp.dot(fs, core_wf[...], preferred_element_type=f32)
           + jnp.dot(cs, core_wc[...], preferred_element_type=f32)
           + core_b[...],
           core_g, core_be),
        0.0)                                                        # [P, H] f32
    core_b16 = core.astype(bf16)

    # context branch: Linear -> LN -> ReLU
    ctx = jnp.maximum(
        ln(jnp.dot(core_b16, ctx_w[...], preferred_element_type=f32) + ctx_b[...],
           ctx_g, ctx_be),
        0.0)                                                        # [P, H] f32

    # attention branch: Linear -> LN -> Tanh -> Linear(->1) -> Sigmoid
    att_h = jnp.tanh(
        ln(jnp.dot(core_b16, att1_w[...], preferred_element_type=f32) + att1_b[...],
           att1_g, att1_be))                                        # [P, L]
    att_logit = jnp.sum(att_h * att2_w[...], axis=-1, keepdims=True) + att2_b[...]
    att = 1.0 / (1.0 + jnp.exp(-att_logit))                         # [P, 1]

    # attention-weighted sum over the K-1 context rows of each focus object
    effect = jnp.dot(agg_ref[...], (ctx * att).astype(bf16),
                     preferred_element_type=f32)                    # [BK, H]

    # out_fc on concat([state1, effect, x]) as three partial matmuls
    new_state = (jnp.dot(state1_b, out_ws[...], preferred_element_type=f32)
                 + jnp.dot(effect.astype(bf16), out_we[...], preferred_element_type=f32)
                 + jnp.dot(x, out_wx[...], preferred_element_type=f32)
                 + out_b[...])                                      # [BK, H] f32

    state_sc[...] = new_state          # recurrent carry stays in VMEM
    o_ref[0] = new_state


# ----------------------------------------------------------------------------
# Host-side helpers
# ----------------------------------------------------------------------------

@functools.lru_cache(maxsize=None)
def _selectors(b, k):
    """0/1 matrices mapping BK object rows to BK*(K-1) pair rows (cached).

    Row ordering matches the PyTorch view(b*k*(k-1), h) flattening:
    r = ((bi*k + i)*(k-1) + ctx_idx).  agg = sel_f.T aggregates pair rows back
    to their focus row for the attention-weighted effect sum.
    """
    bk = b * k
    p_rows = bk * (k - 1)
    sel_f = np.zeros((p_rows, bk), np.float32)
    sel_c = np.zeros((p_rows, bk), np.float32)
    r = 0
    for bi in range(b):
        for i in range(k):
            for j in range(k):
                if j == i:
                    continue
                sel_f[r, bi * k + i] = 1.0
                sel_c[r, bi * k + j] = 1.0
                r += 1
    return (jnp.asarray(sel_f, jnp.bfloat16),
            jnp.asarray(sel_c, jnp.bfloat16),
            jnp.asarray(sel_f.T.copy(), jnp.bfloat16))


def prepare_params(params):
    """One-time host prep: split concat-input weights, cast matmul weights to bf16."""
    h = params["enc_w"].shape[0]
    f32, bf16 = jnp.float32, jnp.bfloat16
    row = lambda v: jnp.asarray(v, f32).reshape(1, -1)
    w = lambda v: jnp.asarray(v, bf16)
    return {
        "enc_w": w(params["enc_w"]),
        "enc_b": row(params["enc_b"]), "enc_g": row(params["enc_g"]), "enc_be": row(params["enc_be"]),
        "core_wf": w(params["core_w"][:h]), "core_wc": w(params["core_w"][h:]),
        "core_b": row(params["core_b"]), "core_g": row(params["core_g"]), "core_be": row(params["core_be"]),
        "ctx_w": w(params["ctx_w"]),
        "ctx_b": row(params["ctx_b"]), "ctx_g": row(params["ctx_g"]), "ctx_be": row(params["ctx_be"]),
        "att1_w": w(params["att1_w"]),
        "att1_b": row(params["att1_b"]), "att1_g": row(params["att1_g"]), "att1_be": row(params["att1_be"]),
        "att2_w": jnp.asarray(params["att2_w"], f32).reshape(1, -1),
        "att2_b": jnp.asarray(params["att2_b"], f32).reshape(1, 1),
        "out_ws": w(params["out_w"][:h]), "out_we": w(params["out_w"][h:2 * h]),
        "out_wx": w(params["out_w"][2 * h:]),
        "out_b": row(params["out_b"]),
    }


def _rnem_steps_impl(pp, xs, state0, sel_f, sel_c, agg):
    """Run T recurrent steps in one pallas_call; weights resident in VMEM."""
    T, bk, m = xs.shape
    h = state0.shape[1]
    p_rows = sel_f.shape[0]
    l = pp["att1_w"].shape[1]

    weights = (
        pp["enc_w"], pp["enc_b"], pp["enc_g"], pp["enc_be"],
        pp["core_wf"], pp["core_wc"], pp["core_b"], pp["core_g"], pp["core_be"],
        pp["ctx_w"], pp["ctx_b"], pp["ctx_g"], pp["ctx_be"],
        pp["att1_w"], pp["att1_b"], pp["att1_g"], pp["att1_be"],
        pp["att2_w"], pp["att2_b"],
        pp["out_ws"], pp["out_we"], pp["out_wx"], pp["out_b"],
    )
    const_args = (state0, sel_f, sel_c, agg) + weights

    def _const_spec(a):
        nd = a.ndim
        return pl.BlockSpec(a.shape, lambda t, _nd=nd: (0,) * _nd)  # constant block -> VMEM resident

    in_specs = [pl.BlockSpec((1, bk, m), lambda t: (t, 0, 0))]
    in_specs += [_const_spec(a) for a in const_args]

    # Advisory cost estimate (multiply-adds * 2); tiny kernel, helps scheduling.
    flops = 2 * T * (bk * h * h + 2 * p_rows * bk * h + 2 * p_rows * h * h
                     + p_rows * h * h + p_rows * h * l + bk * p_rows * h
                     + bk * (2 * h + m) * h)
    trans = T * (p_rows * l + p_rows)
    bytes_accessed = int(
        sum(int(np.prod(a.shape)) * np.dtype(a.dtype).itemsize for a in const_args)
        + int(np.prod(xs.shape)) * 4 + T * bk * h * 4)

    return pl.pallas_call(
        _rnem_kernel,
        out_shape=jax.ShapeDtypeStruct((T, bk, h), jnp.float32),
        grid_spec=pltpu.PrefetchScalarGridSpec(
            num_scalar_prefetch=0,
            grid=(T,),
            in_specs=in_specs,
            out_specs=pl.BlockSpec((1, bk, h), lambda t: (t, 0, 0)),
            scratch_shapes=[pltpu.VMEM((bk, h), jnp.float32)],   # recurrent carry
        ),
        compiler_params=pltpu.CompilerParams(
            # Recurrent dependency through the scratch carry -> sequential axis.
            dimension_semantics=("arbitrary",),
            # Kernel needs only a few MiB; keep scoped-VMEM headroom (v7x = 64 MiB).
            vmem_limit_bytes=16 * 1024 * 1024,
        ),
        cost_estimate=pl.CostEstimate(
            flops=int(flops), transcendentals=int(trans),
            bytes_accessed=bytes_accessed),
    )(xs, *const_args)


_rnem_steps = jax.jit(_rnem_steps_impl)


def r_nem_forward(prepared_params, x, state, b, k):
    """R_NEM.forward: x [B*K, 512], state [B*K, H] -> (new_state, new_state)."""
    assert k > 1 and x.shape[0] == b * k
    sel_f, sel_c, agg = _selectors(b, k)
    out = _rnem_steps(prepared_params, x[None].astype(jnp.float32),
                      state.astype(jnp.float32), sel_f, sel_c, agg)
    new_state = out[0]
    return new_state, new_state


def r_nem_unroll(prepared_params, xs, state, b, k):
    """Run T recurrent steps (xs: [T, B*K, 512]) in one pallas_call."""
    assert k > 1 and xs.shape[1] == b * k
    sel_f, sel_c, agg = _selectors(b, k)
    return _rnem_steps(prepared_params, xs.astype(jnp.float32),
                       state.astype(jnp.float32), sel_f, sel_c, agg)


# ----------------------------------------------------------------------------
# Pure-JAX f32 reference (mirrors the PyTorch forward) + parameter init
# ----------------------------------------------------------------------------

def r_nem_reference(p, x, state, b, k):
    def ln(v, g, be):
        mu = v.mean(-1, keepdims=True)
        var = ((v - mu) ** 2).mean(-1, keepdims=True)
        return (v - mu) / jnp.sqrt(var + _LN_EPS) * g + be

    state1 = jax.nn.relu(ln(state @ p["enc_w"] + p["enc_b"], p["enc_g"], p["enc_be"]))
    h1 = state1.shape[1]
    s1r = state1.reshape(b, k, h1)
    fs = jnp.broadcast_to(s1r[:, :, None, :], (b, k, k - 1, h1))
    idx = np.array([[j for j in range(k) if j != i] for i in range(k)], dtype=np.int32)
    cs = s1r[:, idx, :]                                     # [b, k, k-1, h1]
    concat = jnp.concatenate([fs.reshape(-1, h1), cs.reshape(-1, h1)], axis=1)
    core = jax.nn.relu(ln(concat @ p["core_w"] + p["core_b"], p["core_g"], p["core_be"]))
    ctx = jax.nn.relu(ln(core @ p["ctx_w"] + p["ctx_b"], p["ctx_g"], p["ctx_be"]))
    att = jnp.tanh(ln(core @ p["att1_w"] + p["att1_b"], p["att1_g"], p["att1_be"]))
    att = jax.nn.sigmoid(att @ p["att2_w"] + p["att2_b"])
    eff = jnp.sum(ctx.reshape(b * k, k - 1, h1) * att.reshape(b * k, k - 1, 1), axis=1)
    total = jnp.concatenate([state1, eff, x], axis=1)
    return total @ p["out_w"] + p["out_b"]


def _init_linear(key, fan_in, fan_out):
    # PyTorch nn.Linear default: U(-1/sqrt(fan_in), 1/sqrt(fan_in)) for W and b.
    k1, k2 = jax.random.split(key)
    bound = 1.0 / np.sqrt(fan_in)
    w = jax.random.uniform(k1, (fan_in, fan_out), jnp.float32, -bound, bound)
    bb = jax.random.uniform(k2, (fan_out,), jnp.float32, -bound, bound)
    return w, bb


def init_params(key, fc_size, last_fc_size, x_size=512):
    keys = jax.random.split(key, 6)
    ones = lambda n: jnp.ones((n,), jnp.float32)
    zeros = lambda n: jnp.zeros((n,), jnp.float32)
    p = {}
    p["enc_w"], p["enc_b"] = _init_linear(keys[0], fc_size, fc_size)
    p["enc_g"], p["enc_be"] = ones(fc_size), zeros(fc_size)
    p["core_w"], p["core_b"] = _init_linear(keys[1], 2 * fc_size, fc_size)
    p["core_g"], p["core_be"] = ones(fc_size), zeros(fc_size)
    p["ctx_w"], p["ctx_b"] = _init_linear(keys[2], fc_size, fc_size)
    p["ctx_g"], p["ctx_be"] = ones(fc_size), zeros(fc_size)
    p["att1_w"], p["att1_b"] = _init_linear(keys[3], fc_size, last_fc_size)
    p["att1_g"], p["att1_be"] = ones(last_fc_size), zeros(last_fc_size)
    p["att2_w"], p["att2_b"] = _init_linear(keys[4], last_fc_size, 1)
    p["out_w"], p["out_b"] = _init_linear(keys[5], 2 * fc_size + x_size, fc_size)
    return p


# ----------------------------------------------------------------------------

if __name__ == "__main__":
    b, k = 2, 3                         # batch_size, num groups (k > 1)
    fc_size, last_fc_size = 250, 100    # module defaults
    x_size = 512                        # out_fc hard-codes fc_size + fc_size + 512

    key = jax.random.PRNGKey(0)
    kp, kx, ks, kt = jax.random.split(key, 4)
    params = init_params(kp, fc_size, last_fc_size, x_size)
    pp = prepare_params(params)

    x = jax.random.normal(kx, (b * k, x_size), jnp.float32)
    state = jax.random.normal(ks, (b * k, fc_size), jnp.float32)

    # --- single step (the module's forward semantics) ---
    new_state, new_state2 = r_nem_forward(pp, x, state, b, k)
    jax.block_until_ready((new_state, new_state2))
    assert new_state.shape == (b * k, fc_size), new_state.shape
    assert new_state2.shape == (b * k, fc_size), new_state2.shape
    assert bool(jnp.all(jnp.isfinite(new_state)))

    ref = r_nem_reference(params, x, state, b, k)
    max_err = float(jnp.max(jnp.abs(new_state - ref)))
    mean_err = float(jnp.mean(jnp.abs(new_state - ref)))
    # bf16 matmuls vs f32 reference: expect max err ~1e-2.
    assert max_err < 5e-2, f"kernel vs f32 reference: max abs err = {max_err}"
    assert mean_err < 2.5e-2, f"kernel vs f32 reference: mean abs err = {mean_err}"

    # --- multi-step trajectory: weights stay VMEM-resident across the T grid ---
    T = 4
    xs = jax.random.normal(kt, (T, b * k, x_size), jnp.float32)
    traj = r_nem_unroll(pp, xs, state, b, k)
    jax.block_until_ready(traj)
    assert traj.shape == (T, b * k, fc_size), traj.shape
    assert bool(jnp.all(jnp.isfinite(traj)))

    # Consistency: chaining single-step calls must reproduce the fused trajectory.
    s = state
    for t in range(2):
        s, _ = r_nem_forward(pp, xs[t], s, b, k)
    chain_err = float(jnp.max(jnp.abs(traj[1] - s)))
    assert chain_err < 1e-4, f"multi-step vs chained single-step mismatch: {chain_err}"

    print("KERNEL_OK")
</pallas_src>

<mosaic_0001>
module attributes {stable_mosaic.version = 11 : i64} {
  func.func @_rnem_kernel(%arg0: i32, %arg1: memref<1x6x512xf32, #tpu.memory_space<vmem>>, %arg2: memref<6x250xf32, #tpu.memory_space<vmem>>, %arg3: memref<12x6xbf16, #tpu.memory_space<vmem>>, %arg4: memref<12x6xbf16, #tpu.memory_space<vmem>>, %arg5: memref<6x12xbf16, #tpu.memory_space<vmem>>, %arg6: memref<250x250xbf16, #tpu.memory_space<vmem>>, %arg7: memref<1x250xf32, #tpu.memory_space<vmem>>, %arg8: memref<1x250xf32, #tpu.memory_space<vmem>>, %arg9: memref<1x250xf32, #tpu.memory_space<vmem>>, %arg10: memref<250x250xbf16, #tpu.memory_space<vmem>>, %arg11: memref<250x250xbf16, #tpu.memory_space<vmem>>, %arg12: memref<1x250xf32, #tpu.memory_space<vmem>>, %arg13: memref<1x250xf32, #tpu.memory_space<vmem>>, %arg14: memref<1x250xf32, #tpu.memory_space<vmem>>, %arg15: memref<250x250xbf16, #tpu.memory_space<vmem>>, %arg16: memref<1x250xf32, #tpu.memory_space<vmem>>, %arg17: memref<1x250xf32, #tpu.memory_space<vmem>>, %arg18: memref<1x250xf32, #tpu.memory_space<vmem>>, %arg19: memref<250x100xbf16, #tpu.memory_space<vmem>>, %arg20: memref<1x100xf32, #tpu.memory_space<vmem>>, %arg21: memref<1x100xf32, #tpu.memory_space<vmem>>, %arg22: memref<1x100xf32, #tpu.memory_space<vmem>>, %arg23: memref<1x100xf32, #tpu.memory_space<vmem>>, %arg24: memref<1x1xf32, #tpu.memory_space<vmem>>, %arg25: memref<250x250xbf16, #tpu.memory_space<vmem>>, %arg26: memref<250x250xbf16, #tpu.memory_space<vmem>>, %arg27: memref<512x250xbf16, #tpu.memory_space<vmem>>, %arg28: memref<1x250xf32, #tpu.memory_space<vmem>>, %arg29: memref<1x6x250xf32, #tpu.memory_space<vmem>>, %arg30: memref<6x250xf32, #tpu.memory_space<vmem>>) attributes {dimension_semantics = [#tpu.dimension_semantics<arbitrary>], iteration_bounds = array<i64: 1>, scalar_prefetch = 0 : i64, scratch_operands = 1 : i64, tpu.core_type = #tpu.core_type<tc>, window_params = [{transform_indices = @transform_0, window_bounds = array<i64: 1, 6, 512>}, {pipeline_mode = #tpu.pipeline_mode<synchronous>, transform_indices = @transform_1, window_bounds = array<i64: 6, 250>}, {pipeline_mode = #tpu.pipeline_mode<synchronous>, transform_indices = @transform_2, window_bounds = array<i64: 12, 6>}, {pipeline_mode = #tpu.pipeline_mode<synchronous>, transform_indices = @transform_3, window_bounds = array<i64: 12, 6>}, {pipeline_mode = #tpu.pipeline_mode<synchronous>, transform_indices = @transform_4, window_bounds = array<i64: 6, 12>}, {pipeline_mode = #tpu.pipeline_mode<synchronous>, transform_indices = @transform_5, window_bounds = array<i64: 250, 250>}, {pipeline_mode = #tpu.pipeline_mode<synchronous>, transform_indices = @transform_6, window_bounds = array<i64: 1, 250>}, {pipeline_mode = #tpu.pipeline_mode<synchronous>, transform_indices = @transform_7, window_bounds = array<i64: 1, 250>}, {pipeline_mode = #tpu.pipeline_mode<synchronous>, transform_indices = @transform_8, window_bounds = array<i64: 1, 250>}, {pipeline_mode = #tpu.pipeline_mode<synchronous>, transform_indices = @transform_9, window_bounds = array<i64: 250, 250>}, {pipeline_mode = #tpu.pipeline_mode<synchronous>, transform_indices = @transform_10, window_bounds = array<i64: 250, 250>}, {pipeline_mode = #tpu.pipeline_mode<synchronous>, transform_indices = @transform_11, window_bounds = array<i64: 1, 250>}, {pipeline_mode = #tpu.pipeline_mode<synchronous>, transform_indices = @transform_12, window_bounds = array<i64: 1, 250>}, {pipeline_mode = #tpu.pipeline_mode<synchronous>, transform_indices = @transform_13, window_bounds = array<i64: 1, 250>}, {pipeline_mode = #tpu.pipeline_mode<synchronous>, transform_indices = @transform_14, window_bounds = array<i64: 250, 250>}, {pipeline_mode = #tpu.pipeline_mode<synchronous>, transform_indices = @transform_15, window_bounds = array<i64: 1, 250>}, {pipeline_mode = #tpu.pipeline_mode<synchronous>, transform_indices = @transform_16, window_bounds = array<i64: 1, 250>}, {pipeline_mode = #tpu.pipeline_mode<synchronous>, transform_indices = @transform_17, window_bounds = array<i64: 1, 250>}, {pipeline_mode = #tpu.pipeline_mode<synchronous>, transform_indices = @transform_18, window_bounds = array<i64: 250, 100>}, {pipeline_mode = #tpu.pipeline_mode<synchronous>, transform_indices = @transform_19, window_bounds = array<i64: 1, 100>}, {pipeline_mode = #tpu.pipeline_mode<synchronous>, transform_indices = @transform_20, window_bounds = array<i64: 1, 100>}, {pipeline_mode = #tpu.pipeline_mode<synchronous>, transform_indices = @transform_21, window_bounds = array<i64: 1, 100>}, {pipeline_mode = #tpu.pipeline_mode<synchronous>, transform_indices = @transform_22, window_bounds = array<i64: 1, 100>}, {pipeline_mode = #tpu.pipeline_mode<synchronous>, transform_indices = @transform_23, window_bounds = array<i64: 1, 1>}, {pipeline_mode = #tpu.pipeline_mode<synchronous>, transform_indices = @transform_24, window_bounds = array<i64: 250, 250>}, {pipeline_mode = #tpu.pipeline_mode<synchronous>, transform_indices = @transform_25, window_bounds = array<i64: 250, 250>}, {pipeline_mode = #tpu.pipeline_mode<synchronous>, transform_indices = @transform_26, window_bounds = array<i64: 512, 250>}, {pipeline_mode = #tpu.pipeline_mode<synchronous>, transform_indices = @transform_27, window_bounds = array<i64: 1, 250>}, {transform_indices = @transform_28, window_bounds = array<i64: 1, 6, 250>}]} {
    %c0_i32 = arith.constant 0 : i32
    %0 = arith.cmpi eq, %arg0, %c0_i32 : i32
    %1 = arith.extui %0 : i1 to i32
    %c0_i32_0 = arith.constant 0 : i32
    %2 = arith.cmpi ne, %1, %c0_i32_0 : i32
    scf.if %2 {
      %c0_99 = arith.constant 0 : index
      %c0_100 = arith.constant 0 : index
      %178 = vector.load %arg2[%c0_99, %c0_100] : memref<6x250xf32, #tpu.memory_space<vmem>>, vector<6x250xf32>
      %c0_101 = arith.constant 0 : index
      %c0_102 = arith.constant 0 : index
      %179 = vector.load %arg30[%c0_101, %c0_102] : memref<6x250xf32, #tpu.memory_space<vmem>>, vector<6x250xf32>
      tpu.vector_store %arg30[%c0_101, %c0_102], %178 {strides = array<i32>} : memref<6x250xf32, #tpu.memory_space<vmem>>, vector<6x250xf32>,
    } else {
    }
    %c0 = arith.constant 0 : index
    %c0_1 = arith.constant 0 : index
    %c0_2 = arith.constant 0 : index
    %3 = vector.load %arg1[%c0, %c0_1, %c0_2] : memref<1x6x512xf32, #tpu.memory_space<vmem>>, vector<1x6x512xf32>
    %4 = vector.shape_cast %3 : vector<1x6x512xf32> to vector<6x512xf32>
    %5 = arith.truncf %4 : vector<6x512xf32> to vector<6x512xbf16>
    %c0_3 = arith.constant 0 : index
    %c0_4 = arith.constant 0 : index
    %6 = vector.load %arg30[%c0_3, %c0_4] : memref<6x250xf32, #tpu.memory_space<vmem>>, vector<6x250xf32>
    %7 = arith.truncf %6 : vector<6x250xf32> to vector<6x250xbf16>
    %c0_5 = arith.constant 0 : index
    %c0_6 = arith.constant 0 : index
    %8 = vector.load %arg6[%c0_5, %c0_6] : memref<250x250xbf16, #tpu.memory_space<vmem>>, vector<250x250xbf16>
    %cst = arith.constant dense<0.000000e+00> : vector<6x250xf32>
    %9 = tpu.matmul %7, %8, %cst {dimension_numbers = #tpu.dot_dimension_numbers<[1], [0], [0], [1], [0, 0, 1, 1], [], []>} : vector<6x250xbf16>, vector<250x250xbf16>, vector<6x250xf32> -> vector<6x250xf32>
    %c0_7 = arith.constant 0 : index
    %c0_8 = arith.constant 0 : index
    %10 = vector.load %arg7[%c0_7, %c0_8] : memref<1x250xf32, #tpu.memory_space<vmem>>, vector<1x250xf32>
    %11 = vector.broadcast %10 : vector<1x250xf32> to vector<6x250xf32>
    %12 = arith.addf %9, %11 : vector<6x250xf32>
    %cst_9 = arith.constant dense<0.000000e+00> : vector<6xf32>
    %13 = vector.multi_reduction <add>, %12, %cst_9 [1] : vector<6x250xf32> to vector<6xf32>
    %14 = vector.shape_cast %13 : vector<6xf32> to vector<6x1xf32>
    %cst_10 = arith.constant 2.500000e+02 : f32
    %15 = vector.broadcast %cst_10 : f32 to vector<6x1xf32>
    %16 = arith.divf %14, %15 : vector<6x1xf32>
    %17 = vector.broadcast %16 : vector<6x1xf32> to vector<6x250xf32>
    %18 = arith.subf %12, %17 : vector<6x250xf32>
    %19 = arith.mulf %18, %18 : vector<6x250xf32>
    %cst_11 = arith.constant dense<0.000000e+00> : vector<6xf32>
    %20 = vector.multi_reduction <add>, %19, %cst_11 [1] : vector<6x250xf32> to vector<6xf32>
    %21 = vector.shape_cast %20 : vector<6xf32> to vector<6x1xf32>
    %cst_12 = arith.constant 2.500000e+02 : f32
    %22 = vector.broadcast %cst_12 : f32 to vector<6x1xf32>
    %23 = arith.divf %21, %22 : vector<6x1xf32>
    %24 = vector.broadcast %16 : vector<6x1xf32> to vector<6x250xf32>
    %25 = arith.subf %12, %24 : vector<6x250xf32>
    %cst_13 = arith.constant 9.99999974E-6 : f32
    %26 = vector.broadcast %cst_13 : f32 to vector<6x1xf32>
    %27 = arith.addf %23, %26 : vector<6x1xf32>
    %28 = math.rsqrt %27 : vector<6x1xf32>
    %29 = vector.broadcast %28 : vector<6x1xf32> to vector<6x250xf32>
    %30 = arith.mulf %25, %29 : vector<6x250xf32>
    %c0_14 = arith.constant 0 : index
    %c0_15 = arith.constant 0 : index
    %31 = vector.load %arg8[%c0_14, %c0_15] : memref<1x250xf32, #tpu.memory_space<vmem>>, vector<1x250xf32>
    %32 = vector.broadcast %31 : vector<1x250xf32> to vector<6x250xf32>
    %33 = arith.mulf %30, %32 : vector<6x250xf32>
    %c0_16 = arith.constant 0 : index
    %c0_17 = arith.constant 0 : index
    %34 = vector.load %arg9[%c0_16, %c0_17] : memref<1x250xf32, #tpu.memory_space<vmem>>, vector<1x250xf32>
    %35 = vector.broadcast %34 : vector<1x250xf32> to vector<6x250xf32>
    %36 = arith.addf %33, %35 : vector<6x250xf32>
    %cst_18 = arith.constant 0.000000e+00 : f32
    %37 = vector.broadcast %cst_18 : f32 to vector<6x250xf32>
    %38 = arith.maximumf %36, %37 : vector<6x250xf32>
    %39 = arith.truncf %38 : vector<6x250xf32> to vector<6x250xbf16>
    %c0_19 = arith.constant 0 : index
    %c0_20 = arith.constant 0 : index
    %40 = vector.load %arg3[%c0_19, %c0_20] : memref<12x6xbf16, #tpu.memory_space<vmem>>, vector<12x6xbf16>
    %cst_21 = arith.constant dense<0.000000e+00> : vector<12x250xf32>
    %41 = tpu.matmul %40, %39, %cst_21 {dimension_numbers = #tpu.dot_dimension_numbers<[1], [0], [0], [1], [0, 0, 1, 1], [], []>} : vector<12x6xbf16>, vector<6x250xbf16>, vector<12x250xf32> -> vector<12x250xf32>
    %42 = arith.truncf %41 : vector<12x250xf32> to vector<12x250xbf16>
    %c0_22 = arith.constant 0 : index
    %c0_23 = arith.constant 0 : index
    %43 = vector.load %arg4[%c0_22, %c0_23] : memref<12x6xbf16, #tpu.memory_space<vmem>>, vector<12x6xbf16>
    %cst_24 = arith.constant dense<0.000000e+00> : vector<12x250xf32>
    %44 = tpu.matmul %43, %39, %cst_24 {dimension_numbers = #tpu.dot_dimension_numbers<[1], [0], [0], [1], [0, 0, 1, 1], [], []>} : vector<12x6xbf16>, vector<6x250xbf16>, vector<12x250xf32> -> vector<12x250xf32>
    %45 = arith.truncf %44 : vector<12x250xf32> to vector<12x250xbf16>
    %c0_25 = arith.constant 0 : index
    %c0_26 = arith.constant 0 : index
    %46 = vector.load %arg10[%c0_25, %c0_26] : memref<250x250xbf16, #tpu.memory_space<vmem>>, vector<250x250xbf16>
    %cst_27 = arith.constant dense<0.000000e+00> : vector<12x250xf32>
    %47 = tpu.matmul %42, %46, %cst_27 {dimension_numbers = #tpu.dot_dimension_numbers<[1], [0], [0], [1], [0, 0, 1, 1], [], []>} : vector<12x250xbf16>, vector<250x250xbf16>, vector<12x250xf32> -> vector<12x250xf32>
    %c0_28 = arith.constant 0 : index
    %c0_29 = arith.constant 0 : index
    %48 = vector.load %arg11[%c0_28, %c0_29] : memref<250x250xbf16, #tpu.memory_space<vmem>>, vector<250x250xbf16>
    %cst_30 = arith.constant dense<0.000000e+00> : vector<12x250xf32>
    %49 = tpu.matmul %45, %48, %cst_30 {dimension_numbers = #tpu.dot_dimension_numbers<[1], [0], [0], [1], [0, 0, 1, 1], [], []>} : vector<12x250xbf16>, vector<250x250xbf16>, vector<12x250xf32> -> vector<12x250xf32>
    %50 = arith.addf %47, %49 : vector<12x250xf32>
    %c0_31 = arith.constant 0 : index
    %c0_32 = arith.constant 0 : index
    %51 = vector.load %arg12[%c0_31, %c0_32] : memref<1x250xf32, #tpu.memory_space<vmem>>, vector<1x250xf32>
    %52 = vector.broadcast %51 : vector<1x250xf32> to vector<12x250xf32>
    %53 = arith.addf %50, %52 : vector<12x250xf32>
    %cst_33 = arith.constant dense<0.000000e+00> : vector<12xf32>
    %54 = vector.multi_reduction <add>, %53, %cst_33 [1] : vector<12x250xf32> to vector<12xf32>
    %55 = vector.shape_cast %54 : vector<12xf32> to vector<12x1xf32>
    %cst_34 = arith.constant 2.500000e+02 : f32
    %56 = vector.broadcast %cst_34 : f32 to vector<12x1xf32>
    %57 = arith.divf %55, %56 : vector<12x1xf32>
    %58 = vector.broadcast %57 : vector<12x1xf32> to vector<12x250xf32>
    %59 = arith.subf %53, %58 : vector<12x250xf32>
    %60 = arith.mulf %59, %59 : vector<12x250xf32>
    %cst_35 = arith.constant dense<0.000000e+00> : vector<12xf32>
    %61 = vector.multi_reduction <add>, %60, %cst_35 [1] : vector<12x250xf32> to vector<12xf32>
    %62 = vector.shape_cast %61 : vector<12xf32> to vector<12x1xf32>
    %cst_36 = arith.constant 2.500000e+02 : f32
    %63 = vector.broadcast %cst_36 : f32 to vector<12x1xf32>
    %64 = arith.divf %62, %63 : vector<12x1xf32>
    %65 = vector.broadcast %57 : vector<12x1xf32> to vector<12x250xf32>
    %66 = arith.subf %53, %65 : vector<12x250xf32>
    %cst_37 = arith.constant 9.99999974E-6 : f32
    %67 = vector.broadcast %cst_37 : f32 to vector<12x1xf32>
    %68 = arith.addf %64, %67 : vector<12x1xf32>
    %69 = math.rsqrt %68 : vector<12x1xf32>
    %70 = vector.broadcast %69 : vector<12x1xf32> to vector<12x250xf32>
    %71 = arith.mulf %66, %70 : vector<12x250xf32>
    %c0_38 = arith.constant 0 : index
    %c0_39 = arith.constant 0 : index
    %72 = vector.load %arg13[%c0_38, %c0_39] : memref<1x250xf32, #tpu.memory_space<vmem>>, vector<1x250xf32>
    %73 = vector.broadcast %72 : vector<1x250xf32> to vector<12x250xf32>
    %74 = arith.mulf %71, %73 : vector<12x250xf32>
    %c0_40 = arith.constant 0 : index
    %c0_41 = arith.constant 0 : index
    %75 = vector.load %arg14[%c0_40, %c0_41] : memref<1x250xf32, #tpu.memory_space<vmem>>, vector<1x250xf32>
    %76 = vector.broadcast %75 : vector<1x250xf32> to vector<12x250xf32>
    %77 = arith.addf %74, %76 : vector<12x250xf32>
    %cst_42 = arith.constant 0.000000e+00 : f32
    %78 = vector.broadcast %cst_42 : f32 to vector<12x250xf32>
    %79 = arith.maximumf %77, %78 : vector<12x250xf32>
    %80 = arith.truncf %79 : vector<12x250xf32> to vector<12x250xbf16>
    %c0_43 = arith.constant 0 : index
    %c0_44 = arith.constant 0 : index
    %81 = vector.load %arg15[%c0_43, %c0_44] : memref<250x250xbf16, #tpu.memory_space<vmem>>, vector<250x250xbf16>
    %cst_45 = arith.constant dense<0.000000e+00> : vector<12x250xf32>
    %82 = tpu.matmul %80, %81, %cst_45 {dimension_numbers = #tpu.dot_dimension_numbers<[1], [0], [0], [1], [0, 0, 1, 1], [], []>} : vector<12x250xbf16>, vector<250x250xbf16>, vector<12x250xf32> -> vector<12x250xf32>
    %c0_46 = arith.constant 0 : index
    %c0_47 = arith.constant 0 : index
    %83 = vector.load %arg16[%c0_46, %c0_47] : memref<1x250xf32, #tpu.memory_space<vmem>>, vector<1x250xf32>
    %84 = vector.broadcast %83 : vector<1x250xf32> to vector<12x250xf32>
    %85 = arith.addf %82, %84 : vector<12x250xf32>
    %cst_48 = arith.constant dense<0.000000e+00> : vector<12xf32>
    %86 = vector.multi_reduction <add>, %85, %cst_48 [1] : vector<12x250xf32> to vector<12xf32>
    %87 = vector.shape_cast %86 : vector<12xf32> to vector<12x1xf32>
    %cst_49 = arith.constant 2.500000e+02 : f32
    %88 = vector.broadcast %cst_49 : f32 to vector<12x1xf32>
    %89 = arith.divf %87, %88 : vector<12x1xf32>
    %90 = vector.broadcast %89 : vector<12x1xf32> to vector<12x250xf32>
    %91 = arith.subf %85, %90 : vector<12x250xf32>
    %92 = arith.mulf %91, %91 : vector<12x250xf32>
    %cst_50 = arith.constant dense<0.000000e+00> : vector<12xf32>
    %93 = vector.multi_reduction <add>, %92, %cst_50 [1] : vector<12x250xf32> to vector<12xf32>
    %94 = vector.shape_cast %93 : vector<12xf32> to vector<12x1xf32>
    %cst_51 = arith.constant 2.500000e+02 : f32
    %95 = vector.broadcast %cst_51 : f32 to vector<12x1xf32>
    %96 = arith.divf %94, %95 : vector<12x1xf32>
    %97 = vector.broadcast %89 : vector<12x1xf32> to vector<12x250xf32>
    %98 = arith.subf %85, %97 : vector<12x250xf32>
    %cst_52 = arith.constant 9.99999974E-6 : f32
    %99 = vector.broadcast %cst_52 : f32 to vector<12x1xf32>
    %100 = arith.addf %96, %99 : vector<12x1xf32>
    %101 = math.rsqrt %100 : vector<12x1xf32>
    %102 = vector.broadcast %101 : vector<12x1xf32> to vector<12x250xf32>
    %103 = arith.mulf %98, %102 : vector<12x250xf32>
    %c0_53 = arith.constant 0 : index
    %c0_54 = arith.constant 0 : index
    %104 = vector.load %arg17[%c0_53, %c0_54] : memref<1x250xf32, #tpu.memory_space<vmem>>, vector<1x250xf32>
    %105 = vector.broadcast %104 : vector<1x250xf32> to vector<12x250xf32>
    %106 = arith.mulf %103, %105 : vector<12x250xf32>
    %c0_55 = arith.constant 0 : index
    %c0_56 = arith.constant 0 : index
    %107 = vector.load %arg18[%c0_55, %c0_56] : memref<1x250xf32, #tpu.memory_space<vmem>>, vector<1x250xf32>
    %108 = vector.broadcast %107 : vector<1x250xf32> to vector<12x250xf32>
    %109 = arith.addf %106, %108 : vector<12x250xf32>
    %cst_57 = arith.constant 0.000000e+00 : f32
    %110 = vector.broadcast %cst_57 : f32 to vector<12x250xf32>
    %111 = arith.maximumf %109, %110 : vector<12x250xf32>
    %c0_58 = arith.constant 0 : index
    %c0_59 = arith.constant 0 : index
    %112 = vector.load %arg19[%c0_58, %c0_59] : memref<250x100xbf16, #tpu.memory_space<vmem>>, vector<250x100xbf16>
    %cst_60 = arith.constant dense<0.000000e+00> : vector<12x100xf32>
    %113 = tpu.matmul %80, %112, %cst_60 {dimension_numbers = #tpu.dot_dimension_numbers<[1], [0], [0], [1], [0, 0, 1, 1], [], []>} : vector<12x250xbf16>, vector<250x100xbf16>, vector<12x100xf32> -> vector<12x100xf32>
    %c0_61 = arith.constant 0 : index
    %c0_62 = arith.constant 0 : index
    %114 = vector.load %arg20[%c0_61, %c0_62] : memref<1x100xf32, #tpu.memory_space<vmem>>, vector<1x100xf32>
    %115 = vector.broadcast %114 : vector<1x100xf32> to vector<12x100xf32>
    %116 = arith.addf %113, %115 : vector<12x100xf32>
    %cst_63 = arith.constant dense<0.000000e+00> : vector<12xf32>
    %117 = vector.multi_reduction <add>, %116, %cst_63 [1] : vector<12x100xf32> to vector<12xf32>
    %118 = vector.shape_cast %117 : vector<12xf32> to vector<12x1xf32>
    %cst_64 = arith.constant 1.000000e+02 : f32
    %119 = vector.broadcast %cst_64 : f32 to vector<12x1xf32>
    %120 = arith.divf %118, %119 : vector<12x1xf32>
    %121 = vector.broadcast %120 : vector<12x1xf32> to vector<12x100xf32>
    %122 = arith.subf %116, %121 : vector<12x100xf32>
    %123 = arith.mulf %122, %122 : vector<12x100xf32>
    %cst_65 = arith.constant dense<0.000000e+00> : vector<12xf32>
    %124 = vector.multi_reduction <add>, %123, %cst_65 [1] : vector<12x100xf32> to vector<12xf32>
    %125 = vector.shape_cast %124 : vector<12xf32> to vector<12x1xf32>
    %cst_66 = arith.constant 1.000000e+02 : f32
    %126 = vector.broadcast %cst_66 : f32 to vector<12x1xf32>
    %127 = arith.divf %125, %126 : vector<12x1xf32>
    %128 = vector.broadcast %120 : vector<12x1xf32> to vector<12x100xf32>
    %129 = arith.subf %116, %128 : vector<12x100xf32>
    %cst_67 = arith.constant 9.99999974E-6 : f32
    %130 = vector.broadcast %cst_67 : f32 to vector<12x1xf32>
    %131 = arith.addf %127, %130 : vector<12x1xf32>
    %132 = math.rsqrt %131 : vector<12x1xf32>
    %133 = vector.broadcast %132 : vector<12x1xf32> to vector<12x100xf32>
    %134 = arith.mulf %129, %133 : vector<12x100xf32>
    %c0_68 = arith.constant 0 : index
    %c0_69 = arith.constant 0 : index
    %135 = vector.load %arg21[%c0_68, %c0_69] : memref<1x100xf32, #tpu.memory_space<vmem>>, vector<1x100xf32>
    %136 = vector.broadcast %135 : vector<1x100xf32> to vector<12x100xf32>
    %137 = arith.mulf %134, %136 : vector<12x100xf32>
    %c0_70 = arith.constant 0 : index
    %c0_71 = arith.constant 0 : index
    %138 = vector.load %arg22[%c0_70, %c0_71] : memref<1x100xf32, #tpu.memory_space<vmem>>, vector<1x100xf32>
    %139 = vector.broadcast %138 : vector<1x100xf32> to vector<12x100xf32>
    %140 = arith.addf %137, %139 : vector<12x100xf32>
    %141 = math.tanh %140 : vector<12x100xf32>
    %c0_72 = arith.constant 0 : index
    %c0_73 = arith.constant 0 : index
    %142 = vector.load %arg23[%c0_72, %c0_73] : memref<1x100xf32, #tpu.memory_space<vmem>>, vector<1x100xf32>
    %143 = vector.broadcast %142 : vector<1x100xf32> to vector<12x100xf32>
    %144 = arith.mulf %141, %143 : vector<12x100xf32>
    %cst_74 = arith.constant dense<0.000000e+00> : vector<12xf32>
    %145 = vector.multi_reduction <add>, %144, %cst_74 [1] : vector<12x100xf32> to vector<12xf32>
    %146 = vector.shape_cast %145 : vector<12xf32> to vector<12x1xf32>
    %c0_75 = arith.constant 0 : index
    %c0_76 = arith.constant 0 : index
    %147 = vector.load %arg24[%c0_75, %c0_76] : memref<1x1xf32, #tpu.memory_space<vmem>>, vector<1x1xf32>
    %148 = vector.broadcast %147 : vector<1x1xf32> to vector<12x1xf32>
    %149 = arith.addf %146, %148 : vector<12x1xf32>
    %cst_77 = arith.constant 0.000000e+00 : f32
    %150 = vector.broadcast %cst_77 : f32 to vector<12x1xf32>
    %151 = arith.subf %150, %149 : vector<12x1xf32>
    %152 = math.exp %151 : vector<12x1xf32>
    %cst_78 = arith.constant 1.000000e+00 : f32
    %153 = vector.broadcast %cst_78 : f32 to vector<12x1xf32>
    %154 = arith.addf %153, %152 : vector<12x1xf32>
    %cst_79 = arith.constant 1.000000e+00 : f32
    %155 = vector.broadcast %cst_79 : f32 to vector<12x1xf32>
    %156 = arith.divf %155, %154 : vector<12x1xf32>
    %c0_80 = arith.constant 0 : index
    %c0_81 = arith.constant 0 : index
    %157 = vector.load %arg5[%c0_80, %c0_81] : memref<6x12xbf16, #tpu.memory_space<vmem>>, vector<6x12xbf16>
    %158 = vector.broadcast %156 : vector<12x1xf32> to vector<12x250xf32>
    %159 = arith.mulf %111, %158 : vector<12x250xf32>
    %160 = arith.truncf %159 : vector<12x250xf32> to vector<12x250xbf16>
    %cst_82 = arith.constant dense<0.000000e+00> : vector<6x250xf32>
    %161 = tpu.matmul %157, %160, %cst_82 {dimension_numbers = #tpu.dot_dimension_numbers<[1], [0], [0], [1], [0, 0, 1, 1], [], []>} : vector<6x12xbf16>, vector<12x250xbf16>, vector<6x250xf32> -> vector<6x250xf32>
    %c0_83 = arith.constant 0 : index
    %c0_84 = arith.constant 0 : index
    %162 = vector.load %arg25[%c0_83, %c0_84] : memref<250x250xbf16, #tpu.memory_space<vmem>>, vector<250x250xbf16>
    %cst_85 = arith.constant dense<0.000000e+00> : vector<6x250xf32>
    %163 = tpu.matmul %39, %162, %cst_85 {dimension_numbers = #tpu.dot_dimension_numbers<[1], [0], [0], [1], [0, 0, 1, 1], [], []>} : vector<6x250xbf16>, vector<250x250xbf16>, vector<6x250xf32> -> vector<6x250xf32>
    %164 = arith.truncf %161 : vector<6x250xf32> to vector<6x250xbf16>
    %c0_86 = arith.constant 0 : index
    %c0_87 = arith.constant 0 : index
    %165 = vector.load %arg26[%c0_86, %c0_87] : memref<250x250xbf16, #tpu.memory_space<vmem>>, vector<250x250xbf16>
    %cst_88 = arith.constant dense<0.000000e+00> : vector<6x250xf32>
    %166 = tpu.matmul %164, %165, %cst_88 {dimension_numbers = #tpu.dot_dimension_numbers<[1], [0], [0], [1], [0, 0, 1, 1], [], []>} : vector<6x250xbf16>, vector<250x250xbf16>, vector<6x250xf32> -> vector<6x250xf32>
    %167 = arith.addf %163, %166 : vector<6x250xf32>
    %c0_89 = arith.constant 0 : index
    %c0_90 = arith.constant 0 : index
    %168 = vector.load %arg27[%c0_89, %c0_90] : memref<512x250xbf16, #tpu.memory_space<vmem>>, vector<512x250xbf16>
    %cst_91 = arith.constant dense<0.000000e+00> : vector<6x250xf32>
    %169 = tpu.matmul %5, %168, %cst_91 {dimension_numbers = #tpu.dot_dimension_numbers<[1], [0], [0], [1], [0, 0, 1, 1], [], []>} : vector<6x512xbf16>, vector<512x250xbf16>, vector<6x250xf32> -> vector<6x250xf32>
    %170 = arith.addf %167, %169 : vector<6x250xf32>
    %c0_92 = arith.constant 0 : index
    %c0_93 = arith.constant 0 : index
    %171 = vector.load %arg28[%c0_92, %c0_93] : memref<1x250xf32, #tpu.memory_space<vmem>>, vector<1x250xf32>
    %172 = vector.broadcast %171 : vector<1x250xf32> to vector<6x250xf32>
    %173 = arith.addf %170, %172 : vector<6x250xf32>
    %c0_94 = arith.constant 0 : index
    %c0_95 = arith.constant 0 : index
    %174 = vector.load %arg30[%c0_94, %c0_95] : memref<6x250xf32, #tpu.memory_space<vmem>>, vector<6x250xf32>
    tpu.vector_store %arg30[%c0_94, %c0_95], %173 {strides = array<i32>} : memref<6x250xf32, #tpu.memory_space<vmem>>, vector<6x250xf32>,
    %c0_96 = arith.constant 0 : index
    %c0_97 = arith.constant 0 : index
    %c0_98 = arith.constant 0 : index
    %175 = vector.load %arg29[%c0_96, %c0_97, %c0_98] : memref<1x6x250xf32, #tpu.memory_space<vmem>>, vector<1x6x250xf32>
    %176 = vector.shape_cast %175 : vector<1x6x250xf32> to vector<6x250xf32>
    %177 = vector.shape_cast %173 : vector<6x250xf32> to vector<1x6x250xf32>
    tpu.vector_store %arg29[%c0_96, %c0_97, %c0_98], %177 {strides = array<i32>} : memref<1x6x250xf32, #tpu.memory_space<vmem>>, vector<1x6x250xf32>,
    return
  }
  func.func @transform_0(%arg0: i32) -> (i32, i32, i32) {
    %c0_i32 = arith.constant 0 : i32
    %c0_i32_0 = arith.constant 0 : i32
    %c0_i32_1 = arith.constant 0 : i32
    return %arg0, %c0_i32, %c0_i32_0 : i32, i32, i32
  }
  func.func @transform_1(%arg0: i32) -> (i32, i32) {
    %c0_i32 = arith.constant 0 : i32
    %c0_i32_0 = arith.constant 0 : i32
    %c0_i32_1 = arith.constant 0 : i32
    return %c0_i32, %c0_i32_0 : i32, i32
  }
  func.func @transform_2(%arg0: i32) -> (i32, i32) {
    %c0_i32 = arith.constant 0 : i32
    %c0_i32_0 = arith.constant 0 : i32
    %c0_i32_1 = arith.constant 0 : i32
    return %c0_i32, %c0_i32_0 : i32, i32
  }
  func.func @transform_3(%arg0: i32) -> (i32, i32) {
    %c0_i32 = arith.constant 0 : i32
    %c0_i32_0 = arith.constant 0 : i32
    %c0_i32_1 = arith.constant 0 : i32
    return %c0_i32, %c0_i32_0 : i32, i32
  }
  func.func @transform_4(%arg0: i32) -> (i32, i32) {
    %c0_i32 = arith.constant 0 : i32
    %c0_i32_0 = arith.constant 0 : i32
    %c0_i32_1 = arith.constant 0 : i32
    return %c0_i32, %c0_i32_0 : i32, i32
  }
  func.func @transform_5(%arg0: i32) -> (i32, i32) {
    %c0_i32 = arith.constant 0 : i32
    %c0_i32_0 = arith.constant 0 : i32
    %c0_i32_1 = arith.constant 0 : i32
    return %c0_i32, %c0_i32_0 : i32, i32
  }
  func.func @transform_6(%arg0: i32) -> (i32, i32) {
    %c0_i32 = arith.constant 0 : i32
    %c0_i32_0 = arith.constant 0 : i32
    %c0_i32_1 = arith.constant 0 : i32
    return %c0_i32, %c0_i32_0 : i32, i32
  }
  func.func @transform_7(%arg0: i32) -> (i32, i32) {
    %c0_i32 = arith.constant 0 : i32
    %c0_i32_0 = arith.constant 0 : i32
    %c0_i32_1 = arith.constant 0 : i32
    return %c0_i32, %c0_i32_0 : i32, i32
  }
  func.func @transform_8(%arg0: i32) -> (i32, i32) {
    %c0_i32 = arith.constant 0 : i32
    %c0_i32_0 = arith.constant 0 : i32
    %c0_i32_1 = arith.constant 0 : i32
    return %c0_i32, %c0_i32_0 : i32, i32
  }
  func.func @transform_9(%arg0: i32) -> (i32, i32) {
    %c0_i32 = arith.constant 0 : i32
    %c0_i32_0 = arith.constant 0 : i32
    %c0_i32_1 = arith.constant 0 : i32
    return %c0_i32, %c0_i32_0 : i32, i32
  }
  func.func @transform_10(%arg0: i32) -> (i32, i32) {
    %c0_i32 = arith.constant 0 : i32
    %c0_i32_0 = arith.constant 0 : i32
    %c0_i32_1 = arith.constant 0 : i32
    return %c0_i32, %c0_i32_0 : i32, i32
  }
  func.func @transform_11(%arg0: i32) -> (i32, i32) {
    %c0_i32 = arith.constant 0 : i32
    %c0_i32_0 = arith.constant 0 : i32
    %c0_i32_1 = arith.constant 0 : i32
    return %c0_i32, %c0_i32_0 : i32, i32
  }
  func.func @transform_12(%arg0: i32) -> (i32, i32) {
    %c0_i32 = arith.constant 0 : i32
    %c0_i32_0 = arith.constant 0 : i32
    %c0_i32_1 = arith.constant 0 : i32
    return %c0_i32, %c0_i32_0 : i32, i32
  }
  func.func @transform_13(%arg0: i32) -> (i32, i32) {
    %c0_i32 = arith.constant 0 : i32
    %c0_i32_0 = arith.constant 0 : i32
    %c0_i32_1 = arith.constant 0 : i32
    return %c0_i32, %c0_i32_0 : i32, i32
  }
  func.func @transform_14(%arg0: i32) -> (i32, i32) {
    %c0_i32 = arith.constant 0 : i32
    %c0_i32_0 = arith.constant 0 : i32
    %c0_i32_1 = arith.constant 0 : i32
    return %c0_i32, %c0_i32_0 : i32, i32
  }
  func.func @transform_15(%arg0: i32) -> (i32, i32) {
    %c0_i32 = arith.constant 0 : i32
    %c0_i32_0 = arith.constant 0 : i32
    %c0_i32_1 = arith.constant 0 : i32
    return %c0_i32, %c0_i32_0 : i32, i32
  }
  func.func @transform_16(%arg0: i32) -> (i32, i32) {
    %c0_i32 = arith.constant 0 : i32
    %c0_i32_0 = arith.constant 0 : i32
    %c0_i32_1 = arith.constant 0 : i32
    return %c0_i32, %c0_i32_0 : i32, i32
  }
  func.func @transform_17(%arg0: i32) -> (i32, i32) {
    %c0_i32 = arith.constant 0 : i32
    %c0_i32_0 = arith.constant 0 : i32
    %c0_i32_1 = arith.constant 0 : i32
    return %c0_i32, %c0_i32_0 : i32, i32
  }
  func.func @transform_18(%arg0: i32) -> (i32, i32) {
    %c0_i32 = arith.constant 0 : i32
    %c0_i32_0 = arith.constant 0 : i32
    %c0_i32_1 = arith.constant 0 : i32
    return %c0_i32, %c0_i32_0 : i32, i32
  }
  func.func @transform_19(%arg0: i32) -> (i32, i32) {
    %c0_i32 = arith.constant 0 : i32
    %c0_i32_0 = arith.constant 0 : i32
    %c0_i32_1 = arith.constant 0 : i32
    return %c0_i32, %c0_i32_0 : i32, i32
  }
  func.func @transform_20(%arg0: i32) -> (i32, i32) {
    %c0_i32 = arith.constant 0 : i32
    %c0_i32_0 = arith.constant 0 : i32
    %c0_i32_1 = arith.constant 0 : i32
    return %c0_i32, %c0_i32_0 : i32, i32
  }
  func.func @transform_21(%arg0: i32) -> (i32, i32) {
    %c0_i32 = arith.constant 0 : i32
    %c0_i32_0 = arith.constant 0 : i32
    %c0_i32_1 = arith.constant 0 : i32
    return %c0_i32, %c0_i32_0 : i32, i32
  }
  func.func @transform_22(%arg0: i32) -> (i32, i32) {
    %c0_i32 = arith.constant 0 : i32
    %c0_i32_0 = arith.constant 0 : i32
    %c0_i32_1 = arith.constant 0 : i32
    return %c0_i32, %c0_i32_0 : i32, i32
  }
  func.func @transform_23(%arg0: i32) -> (i32, i32) {
    %c0_i32 = arith.constant 0 : i32
    %c0_i32_0 = arith.constant 0 : i32
    %c0_i32_1 = arith.constant 0 : i32
    return %c0_i32, %c0_i32_0 : i32, i32
  }
  func.func @transform_24(%arg0: i32) -> (i32, i32) {
    %c0_i32 = arith.constant 0 : i32
    %c0_i32_0 = arith.constant 0 : i32
    %c0_i32_1 = arith.constant 0 : i32
    return %c0_i32, %c0_i32_0 : i32, i32
  }
  func.func @transform_25(%arg0: i32) -> (i32, i32) {
    %c0_i32 = arith.constant 0 : i32
    %c0_i32_0 = arith.constant 0 : i32
    %c0_i32_1 = arith.constant 0 : i32
    return %c0_i32, %c0_i32_0 : i32, i32
  }
  func.func @transform_26(%arg0: i32) -> (i32, i32) {
    %c0_i32 = arith.constant 0 : i32
    %c0_i32_0 = arith.constant 0 : i32
    %c0_i32_1 = arith.constant 0 : i32
    return %c0_i32, %c0_i32_0 : i32, i32
  }
  func.func @transform_27(%arg0: i32) -> (i32, i32) {
    %c0_i32 = arith.constant 0 : i32
    %c0_i32_0 = arith.constant 0 : i32
    %c0_i32_1 = arith.constant 0 : i32
    return %c0_i32, %c0_i32_0 : i32, i32
  }
  func.func @transform_28(%arg0: i32) -> (i32, i32, i32) {
    %c0_i32 = arith.constant 0 : i32
    %c0_i32_0 = arith.constant 0 : i32
    %c0_i32_1 = arith.constant 0 : i32
    return %arg0, %c0_i32, %c0_i32_0 : i32, i32, i32
  }
}

</mosaic_0001>

<bundles_post_ra>
// kernel: _rnem_steps_impl.1
= control target key start
LH: loop header
LB: loop body
LE: loop exit
PB: predicated region body
PF: predicated region fallthrough
CT: control target
= control target key end

     0   :  { %s4325_s0 = inlined_call_operand.vmem [shape: f32[1,6,512], index: 0, kind: input, shape index: {}]   ;;  %s4326_s1 = inlined_call_operand.vmem [shape: f32[6,250], index: 1, kind: input, shape index: {}]   ;;  %s4327_s2 = inlined_call_operand.vmem [shape: bf16[12,6], index: 2, kind: input, shape index: {}]   ;;  %s4328_s3 = inlined_call_operand.vmem [shape: bf16[12,6], index: 3, kind: input, shape index: {}]   ;;  %s4329_s4 = inlined_call_operand.vmem [shape: bf16[6,12], index: 4, kind: input, shape index: {}]   ;;  %s4330_s5 = inlined_call_operand.vmem [shape: bf16[250,250], index: 5, kind: input, shape index: {}]   ;;  %s4331_s6 = inlined_call_operand.vmem [shape: f32[1,250], index: 6, kind: input, shape index: {}]   ;;  %s4332_s7 = inlined_call_operand.vmem [shape: f32[1,250], index: 7, kind: input, shape index: {}]   ;;  %s4333_s8 = inlined_call_operand.vmem [shape: f32[1,250], index: 8, kind: input, shape index: {}]   ;;  %s4334_s9 = inlined_call_operand.hbm [shape: bf16[250,250], index: 9, kind: input, shape index: {}]   ;;  %s4335_s10 = inlined_call_operand.hbm [shape: bf16[250,250], index: 10, kind: input, shape index: {}]   ;;  %s4336_s11 = inlined_call_operand.vmem [shape: f32[1,250], index: 11, kind: input, shape index: {}]   ;;  %s4337_s12 = inlined_call_operand.vmem [shape: f32[1,250], index: 12, kind: input, shape index: {}]   ;;  %s4338_s13 = inlined_call_operand.vmem [shape: f32[1,250], index: 13, kind: input, shape index: {}]   ;;  %s4339_s14 = inlined_call_operand.hbm [shape: bf16[250,250], index: 14, kind: input, shape index: {}]   ;;  %s4340_s15 = inlined_call_operand.vmem [shape: f32[1,250], index: 15, kind: input, shape index: {}]   ;;  %s4341_s16 = inlined_call_operand.vmem [shape: f32[1,250], index: 16, kind: input, shape index: {}]   ;;  %s4342_s17 = inlined_call_operand.vmem [shape: f32[1,250], index: 17, kind: input, shape index: {}]   ;;  %s4343_s18 = inlined_call_operand.vmem [shape: bf16[250,100], index: 18, kind: input, shape index: {}]   ;;  %s4344_s19 = inlined_call_operand.vmem [shape: f32[1,100], index: 19, kind: input, shape index: {}]   ;;  %s4345_s20 = inlined_call_operand.vmem [shape: f32[1,100], index: 20, kind: input, shape index: {}]   ;;  %s4346_s21 = inlined_call_operand.vmem [shape: f32[1,100], index: 21, kind: input, shape index: {}]   ;;  %s4347_s22 = inlined_call_operand.vmem [shape: f32[1,100], index: 22, kind: input, shape index: {}]   ;;  %s4348_s23 = inlined_call_operand.<no memory space> [shape: f32[1,1], index: 23, kind: input, shape index: {}]   ;;  %s4349_s24 = inlined_call_operand.hbm [shape: bf16[250,250], index: 24, kind: input, shape index: {}]   ;;  %s4350_s25 = inlined_call_operand.hbm [shape: bf16[250,250], index: 25, kind: input, shape index: {}]   ;;  %s4351_s26 = inlined_call_operand.hbm [shape: bf16[512,250], index: 26, kind: input, shape index: {}]   ;;  %s4352_s27 = inlined_call_operand.vmem [shape: f32[1,250], index: 27, kind: input, shape index: {}]   ;;  %s4353_s28 = inlined_call_operand.vmem [shape: f32[1,6,250], index: 28, kind: output, shape index: {}]  }
   0x1   :  { %4360 = sst [smem:[#allocation18_spill]] %s4325_s0  ;;  %v33_v0 = vstv %s4348_s23 }
   0x2   :  { %4361 = sst [smem:[#allocation19_spill]] %s4326_s1  ;;  %34 = vst [vmem:[#allocation3] sm:$0x1] %v33_v0 }
   0x3   :  { %4362 = sst [smem:[#allocation20_spill]] %s4327_s2 }
   0x4   :  { %4363 = sst [smem:[#allocation21_spill]] %s4328_s3 }
   0x5   :  { %4364 = sst [smem:[#allocation22_spill]] %s4329_s4 }
   0x6   :  { %4365 = sst [smem:[#allocation23_spill]] %s4330_s5 }
   0x7   :  { %4366 = sst [smem:[#allocation24_spill]] %s4331_s6 }
   0x8   :  { %4367 = sst [smem:[#allocation25_spill]] %s4332_s7 }
   0x9   :  { %4368 = sst [smem:[#allocation26_spill]] %s4333_s8 }
   0xa   :  { %4369 = sst [smem:[#allocation27_spill]] %s4334_s9 }
   0xb   :  { %4370 = sst [smem:[#allocation28_spill]] %s4335_s10 }
   0xc   :  { %4371 = sst [smem:[#allocation29_spill]] %s4336_s11 }
   0xd   :  { %4372 = sst [smem:[#allocation30_spill]] %s4337_s12 }
   0xe   :  { %4373 = sst [smem:[#allocation31_spill]] %s4353_s28 }
   0xf   :  { %35 = vsyncpa [#allocation5], 0 }
  0x10   :  { %36 = vsyncpa [#allocation7], 0 }
  0x11   :  { %37 = vsyncpa [#allocation10], 0 }
  0x12   :  { %38 = vsyncpa [#allocation13], 0  ;;  %s3738_s9 = smov [#allocation6]   ;;  %s3739_s3 = smov [#allocation9]  }
  0x13   :  { %s74_s30 = sshll.u32 %s3738_s9, 4  ;;  %s122_s6 = sshll.u32 %s3739_s3, 4  ;;  %s75_s30 = int_to_ptr.vmem [resolvable:$true] %s74_s30  ;;  %s3895_s6 = int_to_ptr.vmem [resolvable:$true] %s122_s6 }
  0x14   :  { %s4374_s11 = sld [smem:[#allocation28_spill]] }
  0x1a   :  { %s3598_s29 = scalar_lea.hbm %s4374_s11, 4096 }
  0x1b   :  { %p3599_p0 = scmp.ne.s32.totalorder %s4374_s11, %s3598_s29  ;;  %p3602_p1 = scmp.lt.u32.totalorder %s3598_s29, %s4374_s11 }
  0x1d   :  { %p3604_p2 = pnand %p3602_p1, %p3599_p0 }
  0x1f   :  { %3607 = shalt.err (!%p3604_p2)
}
  0x20   :  { %s3608_s1 = scalar_lea.vmem %s75_s30, 4096  ;;  %p3613_p4 = scmp.lt.s32.totalorder %s75_s30, %s75_s30 }
  0x21   :  { %p3609_p3 = scmp.ne.s32.totalorder %s75_s30, %s3608_s1  ;;  %p3614_p5 = scmp.lt.s32.totalorder %s3608_s1, %s3608_s1 }
  0x23   :  { %p3615_p6 = por %p3614_p5, %p3613_p4 }
  0x25   :  { %p3616_p7 = pnand %p3615_p6, %p3609_p3 }
  0x27   :  { %3619 = shalt.err (!%p3616_p7)
}
  0x28   :  { %s3740_s4 = smov 128   ;;  %s3741_s8 = smov 8  }
  0x29   :  { %80 = dma.hbm_to_vmem [thread:$0]  %s4374_s11, 4096, %s75_s30, [#allocation7], %s3740_s4, %s3740_s4, %s3741_s8  }
  0x2a   :  { %s3620_s0 = scalar_lea.hbm %s4349_s24, 4096 }
  0x2b   :  { %p3621_p8 = scmp.ne.s32.totalorder %s4349_s24, %s3620_s0  ;;  %p3624_p9 = scmp.lt.u32.totalorder %s3620_s0, %s4349_s24 }
  0x2d   :  { %p3626_p10 = pnand %p3624_p9, %p3621_p8 }
  0x2f   :  { %3629 = shalt.err (!%p3626_p10)
}
  0x30   :  { %s3630_s12 = scalar_lea.vmem %s3895_s6, 4096  ;;  %p3635_p12 = scmp.lt.s32.totalorder %s3895_s6, %s3895_s6 }
  0x31   :  { %p3631_p11 = scmp.ne.s32.totalorder %s3895_s6, %s3630_s12  ;;  %p3636_p13 = scmp.lt.s32.totalorder %s3630_s12, %s3630_s12 }
  0x33   :  { %p3637_p0 = por %p3636_p13, %p3635_p12 }
  0x35   :  { %p3638_p1 = pnand %p3637_p0, %p3631_p11 }
  0x37   :  { %3641 = shalt.err (!%p3638_p1)
}
  0x38   :  { %128 = dma.hbm_to_vmem [thread:$0]  %s4349_s24, 4096, %s3895_s6, [#allocation10], %s3740_s4, %s3740_s4, %s3741_s8  }
  0x39   :  { %s3742_s1 = smov [#allocation4]   ;;  %s3743_s9 = smov [#allocation8]  }
  0x3a   :  { %s62_s5 = sshll.u32 %s3742_s1, 4  ;;  %s92_s3 = sshll.u32 %s3743_s9, 4  ;;  %s63_s5 = int_to_ptr.vmem [resolvable:$true] %s62_s5  ;;  %s3932_s3 = int_to_ptr.vmem [resolvable:$true] %s92_s3 }
  0x3b   :  { %s4375_s29 = sld [smem:[#allocation27_spill]] }
  0x41   :  { %s3642_s2 = scalar_lea.hbm %s4375_s29, 4096 }
  0x42   :  { %p3643_p2 = scmp.ne.s32.totalorder %s4375_s29, %s3642_s2  ;;  %p3646_p3 = scmp.lt.u32.totalorder %s3642_s2, %s4375_s29 }
  0x44   :  { %p3648_p4 = pnand %p3646_p3, %p3643_p2 }
  0x46   :  { %3651 = shalt.err (!%p3648_p4)
}
  0x47   :  { %s3652_s24 = scalar_lea.vmem %s63_s5, 4096  ;;  %p3657_p6 = scmp.lt.s32.totalorder %s63_s5, %s63_s5 }
  0x48   :  { %p3653_p5 = scmp.ne.s32.totalorder %s63_s5, %s3652_s24  ;;  %p3658_p7 = scmp.lt.s32.totalorder %s3652_s24, %s3652_s24 }
  0x4a   :  { %p3659_p8 = por %p3658_p7, %p3657_p6 }
  0x4c   :  { %p3660_p9 = pnand %p3659_p8, %p3653_p5 }
  0x4e   :  { %3663 = shalt.err (!%p3660_p9)
}
  0x4f   :  { %68 = dma.hbm_to_vmem [thread:$0]  %s4375_s29, 4096, %s63_s5, [#allocation5], %s3740_s4, %s3740_s4, %s3741_s8  }
  0x50   :  { %s3664_s28 = scalar_lea.hbm %s4339_s14, 4096 }
  0x51   :  { %p3665_p10 = scmp.ne.s32.totalorder %s4339_s14, %s3664_s28  ;;  %p3668_p11 = scmp.lt.u32.totalorder %s3664_s28, %s4339_s14 }
  0x53   :  { %p3670_p12 = pnand %p3668_p11, %p3665_p10 }
  0x55   :  { %3673 = shalt.err (!%p3670_p12)
}
  0x56   :  { %s3674_s7 = scalar_lea.vmem %s3932_s3, 4096  ;;  %p3679_p0 = scmp.lt.s32.totalorder %s3932_s3, %s3932_s3 }
  0x57   :  { %p3675_p13 = scmp.ne.s32.totalorder %s3932_s3, %s3674_s7  ;;  %p3680_p1 = scmp.lt.s32.totalorder %s3674_s7, %s3674_s7 }
  0x59   :  { %p3681_p2 = por %p3680_p1, %p3679_p0 }
  0x5b   :  { %p3682_p3 = pnand %p3681_p2, %p3675_p13 }
  0x5d   :  { %3685 = shalt.err (!%p3682_p3)
}
  0x5e   :  { %98 = dma.hbm_to_vmem [thread:$0]  %s4339_s14, 4096, %s3932_s3, [#allocation7], %s3740_s4, %s3740_s4, %s3741_s8  }
  0x5f   :  { %s3744_s23 = smov [#allocation11]   ;;  %s3745_s24 = smov [#allocation12]  }
  0x60   :  { %s134_s12 = sshll.u32 %s3744_s23, 4  ;;  %s146_s6 = sshll.u32 %s3745_s24, 4  ;;  %s135_s12 = int_to_ptr.vmem [resolvable:$true] %s134_s12  ;;  %s3969_s6 = int_to_ptr.vmem [resolvable:$true] %s146_s6 }
  0x61   :  { %s3686_s1 = scalar_lea.hbm %s4350_s25, 4096 }
  0x62   :  { %p3687_p4 = scmp.ne.s32.totalorder %s4350_s25, %s3686_s1  ;;  %p3690_p5 = scmp.lt.u32.totalorder %s3686_s1, %s4350_s25 }
  0x64   :  { %p3692_p6 = pnand %p3690_p5, %p3687_p4 }
  0x66   :  { %3695 = shalt.err (!%p3692_p6)
}
  0x67   :  { %s3696_s14 = scalar_lea.vmem %s135_s12, 4096  ;;  %p3701_p8 = scmp.lt.s32.totalorder %s135_s12, %s135_s12 }
  0x68   :  { %p3697_p7 = scmp.ne.s32.totalorder %s135_s12, %s3696_s14  ;;  %p3702_p9 = scmp.lt.s32.totalorder %s3696_s14, %s3696_s14 }
  0x6a   :  { %p3703_p10 = por %p3702_p9, %p3701_p8 }
  0x6c   :  { %p3704_p11 = pnand %p3703_p10, %p3697_p7 }
  0x6e   :  { %3707 = shalt.err (!%p3704_p11)
}
  0x6f   :  { %140 = dma.hbm_to_vmem [thread:$0]  %s4350_s25, 4096, %s135_s12, [#allocation10], %s3740_s4, %s3740_s4, %s3741_s8  }
  0x70   :  { %s3708_s29 = scalar_lea.hbm %s4351_s26, 8192 }
  0x71   :  { %p3709_p12 = scmp.ne.s32.totalorder %s4351_s26, %s3708_s29  ;;  %p3712_p13 = scmp.lt.u32.totalorder %s3708_s29, %s4351_s26 }
  0x73   :  { %p3714_p0 = pnand %p3712_p13, %p3709_p12 }
  0x75   :  { %3717 = shalt.err (!%p3714_p0)
}
  0x76   :  { %s3718_s1 = scalar_lea.vmem %s3969_s6, 8192  ;;  %p3723_p2 = scmp.lt.s32.totalorder %s3969_s6, %s3969_s6 }
  0x77   :  { %p3719_p1 = scmp.ne.s32.totalorder %s3969_s6, %s3718_s1  ;;  %p3724_p3 = scmp.lt.s32.totalorder %s3718_s1, %s3718_s1 }
  0x79   :  { %p3725_p4 = por %p3724_p3, %p3723_p2 }
  0x7b   :  { %p3726_p5 = pnand %p3725_p4, %p3719_p1 }
  0x7d   :  { %3729 = shalt.err (!%p3726_p5)
}
  0x7e   :  { %152 = dma.hbm_to_vmem [thread:$0]  %s4351_s26, 8192, %s3969_s6, [#allocation13], %s3740_s4, %s3740_s4, %s3741_s8  }
  0x7f   :  { %3730 = dma.done.wait [#allocation5], 4096  }
  0x80   :  { %3731 = vsyncadd [#allocation5], 4294963200 }
  0x81   :  { %3732 = dma.done.wait [#allocation7], 8192  }
  0x82   :  { %3733 = vsyncadd [#allocation7], 4294959104 }
  0x83   :  { %3734 = dma.done.wait [#allocation10], 8192  }
  0x84   :  { %3735 = vsyncadd [#allocation10], 4294959104 }
  0x85   :  { %3736 = dma.done.wait [#allocation13], 8192  }
  0x86   :  { %3737 = vsyncadd [#allocation13], 4294959104  ;;  %s4376_s10 = sld [smem:[#allocation23_spill]]  ;;  %vm181_vm0 = vcmask 996352   ;;  %s4377_s7 = sld [smem:[#allocation19_spill]]  ;;  %vm397_vm1 = vcmask 998400   ;;  %v229_v40 = vlaneseq }
  0x87   :  { %vm401_vm2 = vcmask 1044480   ;;  %s4378_s5 = sld [smem:[#allocation24_spill]]  ;;  %vm449_vm3 = vcmask 1045504   ;;  %s4379_s23 = sld [smem:[#allocation25_spill]]  ;;  %vm515_vm4 = vcmask 1042432   ;;  %vm511_vm5 = vcmask 48128  }
  0x88   :  { %v230_v41 = vshrl.u32 %v229_v40, 7  ;;  %s4380_s11 = sld [smem:[#allocation26_spill]]  ;;  %s4381_s12 = sld [smem:[#allocation20_spill]]  ;;  %v3241_v40 = vld [vmem:[#allocation6 + $0x70] ss:$8 sps:$4 sm:$0xff]   ;;  %vm1126_vm6 = vcmask 1043456  }
  0x89   :  { %s4382_s0 = sld [smem:[#allocation21_spill]]  ;;  %vm1128_vm7 = vcmask 994304   ;;  %vm1706_vm8 = vcmask 818176   ;;  %vm1710_vm9 = vcmask 814080   ;;  %s4385_s4 = sld [smem:[#allocation22_spill]]  ;;  %vm1808_vm10 = vcmask 97280  }
  0x8a   :  { %v4112_v42 = vsub.s32 0, %v230_v41  ;;  %v4117_v44 = vsub.s32 1, %v230_v41  ;;  %v3246_v41 = vld [vmem:[#allocation6 + $0x84] ss:$8 sps:$4 sm:$0xff]   ;;  %s4383_s2 = sld [smem:[#allocation29_spill]] }
  0x8c   :  { %v3170_v1 = vld [vmem:[%s4376_s10 + $0x4] ss:$8 sps:$4 sm:$0xff]   ;;  %v3172_v2 = vld [vmem:[%s4376_s10] ss:$8 sps:$4 sm:$0xff]   ;;  %v3173_v3 = vld [vmem:[%s4376_s10 + $0x14] ss:$8 sps:$4 sm:$0xff]  }
  0x8d   :  { %408 = vmatprep.subr.bf16.mxu0 %v3170_v1  ;;  %v3175_v4 = vld [vmem:[%s4376_s10 + $0x10] ss:$8 sps:$4 sm:$0xff]   ;;  %v3176_v5 = vld [vmem:[%s4376_s10 + $0x24] ss:$8 sps:$4 sm:$0xff]   ;;  %v3178_v6 = vld [vmem:[%s4376_s10 + $0x20] ss:$8 sps:$4 sm:$0xff]  }
  0x8e   :  { %409 = vmatpush1.bf16.msra.mxu0 %v3172_v2  ;;  %v3179_v7 = vld [vmem:[%s4376_s10 + $0x34] ss:$8 sps:$4 sm:$0xff]   ;;  %v3181_v8 = vld [vmem:[%s4376_s10 + $0x30] ss:$8 sps:$4 sm:$0xff]   ;;  %v3182_v9 = vld [vmem:[%s4376_s10 + $0x44] ss:$8 sps:$4 sm:$0xff]  }
  0x8f   :  { %410 = vmatprep.subr.bf16.mxu0 %v3173_v3  ;;  %v3184_v10 = vld [vmem:[%s4376_s10 + $0x40] ss:$8 sps:$4 sm:$0xff]   ;;  %v3185_v11 = vld [vmem:[%s4376_s10 + $0x54] ss:$8 sps:$4 sm:$0xff]   ;;  %v3187_v12 = vld [vmem:[%s4376_s10 + $0x50] ss:$8 sps:$4 sm:$0xff]  }
  0x90   :  { %v3188_v13 = vld [vmem:[%s4376_s10 + $0x64] ss:$8 sps:$4 sm:$0xff]   ;;  %v3190_v14 = vld [vmem:[%s4376_s10 + $0x60] ss:$8 sps:$4 sm:$0xff]   ;;  %v3191_v16 = vld [vmem:[%s4376_s10 + $0x74] ss:$8 sps:$4 sm:$0xff]  }
  0x91   :  { %v179_v15 = vld [vmem:[%s4377_s7 + $0x8] sm:$0x3f]  ;;  %v178_v17 = vld [vmem:[%s4377_s7] sm:$0x3f]  ;;  %v3193_v18 = vld [vmem:[%s4376_s10 + $0x70] ss:$8 sps:$4 sm:$0xff]  }
  0x92   :  { %411 = vmatpush1.bf16.msra.mxu0 %v3175_v4  ;;  %182 = vst.msk [vmem:[#allocation2 + $0x8] sm:$0x3f] %vm181_vm0, %v179_v15  ;;  %180 = vst [vmem:[#allocation2] sm:$0x3f] %v178_v17  ;;  %v3194_v19 = vld [vmem:[%s4376_s10 + $0x84] ss:$8 sps:$4 sm:$0xff]  }
  0x93   :  { %412 = vmatprep.subr.bf16.mxu0 %v3176_v5  ;;  %v3196_v20 = vld [vmem:[%s4376_s10 + $0x80] ss:$8 sps:$4 sm:$0xff]   ;;  %v3197_v22 = vld [vmem:[%s4376_s10 + $0x94] ss:$8 sps:$4 sm:$0xff]   ;;  %v3199_v24 = vld [vmem:[%s4376_s10 + $0x90] ss:$8 sps:$4 sm:$0xff]  }
  0x94   :  { %v3200_v25 = vld [vmem:[%s4376_s10 + $0xa4] ss:$8 sps:$4 sm:$0xff]   ;;  %v3202_v26 = vld [vmem:[%s4376_s10 + $0xa0] ss:$8 sps:$4 sm:$0xff]   ;;  %v3203_v27 = vld [vmem:[%s4376_s10 + $0xb4] ss:$8 sps:$4 sm:$0xff]  }
  0x95   :  { %v3205_v28 = vld [vmem:[%s4376_s10 + $0xb0] ss:$8 sps:$4 sm:$0xff]   ;;  %v3206_v29 = vld [vmem:[%s4376_s10 + $0xc4] ss:$8 sps:$4 sm:$0xff]   ;;  %v3208_v30 = vld [vmem:[%s4376_s10 + $0xc0] ss:$8 sps:$4 sm:$0xff]  }
  0x96   :  { %413 = vmatpush1.bf16.msra.mxu0 %v3178_v6  ;;  %v3209_v31 = vld [vmem:[%s4376_s10 + $0xd4] ss:$8 sps:$4 sm:$0xff]   ;;  %v3211_v32 = vld [vmem:[%s4376_s10 + $0xd0] ss:$8 sps:$4 sm:$0xff]   ;;  %v3212_v34 = vld [vmem:[%s4376_s10 + $0xe4] ss:$8 sps:$4 sm:$0xff]  }
  0x97   :  { %414 = vmatprep.subr.bf16.mxu0 %v3179_v7  ;;  %v3217_v33 = vld [vmem:[%s4376_s10 + $0xf0] ss:$8 sps:$4 sm:$0x1f]   ;;  %v3214_v35 = vld [vmem:[%s4376_s10 + $0xe0] ss:$8 sps:$4 sm:$0xff]   ;;  %v3746_v1 = vmov 0  }
  0x98   :  { %v3215_v36 = vld [vmem:[%s4376_s10 + $0xf4] ss:$8 sps:$4 sm:$0x1f]   ;;  %v403_v37 = vsel %vm401_vm2, %v3217_v33, 0  ;;  %v227_v43 = vld [vmem:[%s4378_s5] sm:$0x3]  ;;  %554 = vmatprep.mubr.bf16.mxu1 %v3746_v1  ;;  %3168 = vset.pattern.permute.xlu0 %v3746_v1 }
  0x99   :  { %v192_v21 = vld [vmem:[#allocation2 + $0x8] sm:$0x3f]  ;;  %v191_v38 = vld [vmem:[#allocation2] sm:$0x3f]  ;;  %v232_v45 = vrot.slane %v227_v43, %v4112_v42  ;;  %v236_v46 = vrot.slane %v227_v43, %v4117_v44  ;;  %3169 = vset.pattern.permute.xlu1 %v3746_v1  ;;  %v3244_v43 = vld [vmem:[#allocation6 + $0x80] ss:$8 sps:$4 sm:$0xff]  }
  0x9a   :  { %415 = vmatpush1.bf16.msra.mxu0 %v3181_v8  ;;  %v194_v23 = vpack.c.bf16 %v192_v21, %v192_v21  ;;  %v193_v39 = vpack.c.bf16 %v191_v38, %v191_v38  ;;  %v472_v5 = vld [vmem:[%s4379_s23] sm:$0x3]  ;;  %v3238_v38 = vld [vmem:[#allocation6 + $0x60] ss:$8 sps:$4 sm:$0xff]   ;;  %s4384_s7 = sld [smem:[#allocation30_spill]] }
  0x9b   :  { %416 = vmatprep.subr.bf16.mxu0 %v3182_v9  ;;  %v486_v6 = vld [vmem:[%s4380_s11] sm:$0x3]  ;;  %v481_v7 = vrot.slane %v472_v5, %v4117_v44  ;;  %v477_v8 = vrot.slane %v472_v5, %v4112_v42 }
  0x9c   :  { %2867 = vmatprep.mubr.msk.bf16.mxu0 %vm397_vm1, %v194_v23  ;;  %v3218_v23 = vld [vmem:[%s4381_s12] sm:$0x3f]  }
  0x9d   :  { %v3234_v33 = vld [vmem:[#allocation6 + $0x44] ss:$8 sps:$4 sm:$0xff]  }
  0x9e   :  { %417 = vmatpush1.bf16.msra.mxu0 %v3184_v10 }
  0x9f   :  { %418 = vmatprep.subr.bf16.mxu0 %v3185_v11  ;;  %v495_v11 = vrot.slane %v486_v6, %v4117_v44 }
  0xa2   :  { %419 = vmatpush1.bf16.msra.mxu0 %v3187_v12 }
  0xa3   :  { %420 = vmatprep.subr.bf16.mxu0 %v3188_v13  ;;  %v491_v13 = vrot.slane %v486_v6, %v4112_v42 }
  0xa6   :  { %421 = vmatpush1.bf16.msra.mxu0 %v3190_v14 }
  0xa7   :  { %422 = vmatprep.subr.bf16.mxu0 %v3191_v16 }
  0xaa   :  { %423 = vmatpush1.bf16.msra.mxu0 %v3193_v18 }
  0xab   :  { %424 = vmatprep.subr.bf16.mxu0 %v3194_v19 }
  0xae   :  { %425 = vmatpush1.bf16.msra.mxu0 %v3196_v20 }
  0xaf   :  { %426 = vmatprep.subr.bf16.mxu0 %v3197_v22 }
  0xb2   :  { %427 = vmatpush1.bf16.msra.mxu0 %v3199_v24  ;;  %v3222_v24 = vld [vmem:[#allocation6 + $0x4] ss:$8 sps:$4 sm:$0xff]  }
  0xb3   :  { %428 = vmatprep.subr.bf16.mxu0 %v3200_v25  ;;  %v3219_v25 = vld [vmem:[%s4382_s0] sm:$0x3f]  }
  0xb6   :  { %429 = vmatpush1.bf16.msra.mxu0 %v3202_v26  ;;  %v3220_v26 = vld [vmem:[#allocation6] ss:$8 sps:$4 sm:$0xff]  }
  0xb7   :  { %430 = vmatprep.subr.bf16.mxu0 %v3203_v27  ;;  %v3225_v27 = vld [vmem:[#allocation6 + $0x14] ss:$8 sps:$4 sm:$0xff]  }
  0xba   :  { %431 = vmatpush1.bf16.msra.mxu0 %v3205_v28  ;;  %v3223_v28 = vld [vmem:[#allocation6 + $0x10] ss:$8 sps:$4 sm:$0xff]  }
  0xbb   :  { %432 = vmatprep.subr.bf16.mxu0 %v3206_v29  ;;  %v3228_v29 = vld [vmem:[#allocation6 + $0x24] ss:$8 sps:$4 sm:$0xff]  }
  0xbe   :  { %433 = vmatpush1.bf16.msra.mxu0 %v3208_v30  ;;  %v3226_v30 = vld [vmem:[#allocation6 + $0x20] ss:$8 sps:$4 sm:$0xff]  }
  0xbf   :  { %434 = vmatprep.subr.bf16.mxu0 %v3209_v31  ;;  %v3231_v31 = vld [vmem:[#allocation6 + $0x34] ss:$8 sps:$4 sm:$0xff]  }
  0xc2   :  { %435 = vmatpush1.bf16.msra.mxu0 %v3211_v32  ;;  %v3229_v32 = vld [vmem:[#allocation6 + $0x30] ss:$8 sps:$4 sm:$0xff]  }
  0xc3   :  { %436 = vmatprep.subr.bf16.mxu0 %v3212_v34  ;;  %v3232_v34 = vld [vmem:[#allocation6 + $0x40] ss:$8 sps:$4 sm:$0xff]  }
  0xc6   :  { %437 = vmatpush1.bf16.msra.mxu0 %v3214_v35  ;;  %v3237_v35 = vld [vmem:[#allocation6 + $0x54] ss:$8 sps:$4 sm:$0xff]  }
  0xc7   :  { %2866 = vmatprep.subr.msk.bf16.mxu0 %vm401_vm2, %v3215_v36  ;;  %v3235_v36 = vld [vmem:[#allocation6 + $0x50] ss:$8 sps:$4 sm:$0xff]  }
  0xca   :  { %439 = vmatpush1.bf16.msra.mxu0 %v403_v37  ;;  %v3240_v37 = vld [vmem:[#allocation6 + $0x64] ss:$8 sps:$4 sm:$0xff]  }
  0xcd   :  { %441 = vmatmul.mubr.bf16.vlgmr.msra.gmra.mrb[0].mxu0 %v193_v39  ;;  %v3243_v39 = vld [vmem:[#allocation6 + $0x74] ss:$8 sps:$4 sm:$0xff]  }
 0x1a0   :  { %v442_v47 = vpop.f32.mrb[0].mxu0 }
 0x1a1   :  { %v443_v48 = vadd.f32 %v442_v47, %v232_v45  ;;  %v444_v49 = vpop.f32.mrb[1].mxu0  ;;  %v3249_v45 = vld [vmem:[#allocation6 + $0x94] ss:$8 sps:$4 sm:$0xff]   ;;  %v3252_v47 = vld [vmem:[#allocation6 + $0xa4] ss:$8 sps:$4 sm:$0xff]  }
 0x1a2   :  { %v445_v50 = vadd.f32 %v444_v49, %v236_v46  ;;  %v446_v51 = vpop.f32.mrb[2].mxu0  ;;  %v3247_v46 = vld [vmem:[#allocation6 + $0x90] ss:$8 sps:$4 sm:$0xff]   ;;  %v3255_v49 = vld [vmem:[#allocation6 + $0xb4] ss:$8 sps:$4 sm:$0xff]  }
 0x1a3   :  { %v447_v52 = vpop.f32.mrb[3].mxu0  ;;  %v450_v53 = vsel %vm449_vm3, %v443_v48, 0.0  ;;  %v3258_v51 = vld [vmem:[#allocation6 + $0xc4] ss:$8 sps:$4 sm:$0xff]  }
 0x1a4   :  { %v452_v54 = vsel %vm181_vm0, %v445_v50, 0.0  ;;  %v3256_v52 = vld [vmem:[#allocation6 + $0xc0] ss:$8 sps:$4 sm:$0xff]  }
 0x1a5   :  { %v453_v55 = vadd.f32 %v452_v54, %v450_v53  ;;  %v3261_v53 = vld [vmem:[#allocation6 + $0xd4] ss:$8 sps:$4 sm:$0xff]   ;;  %v3259_v54 = vld [vmem:[#allocation6 + $0xd0] ss:$8 sps:$4 sm:$0xff]  }
 0x1a7   :  { %454 = vadd.xlane.f32.xlu0 %v453_v55  ;;  %v3262_v55 = vld [vmem:[#allocation6 + $0xe0] ss:$8 sps:$4 sm:$0xff]  }
 0x234   :  { %v455_v56 = vpop.xlane.xlu0 %454 }
 0x235   :  { %v457_v57 = vmul.f32 0.004, %v455_v56  ;;  %v3264_v56 = vld [vmem:[#allocation6 + $0xe4] ss:$8 sps:$4 sm:$0xff]  }
 0x237   :  { %v458_v58 = vsub.f32 %v443_v48, %v457_v57  ;;  %v459_v59 = vsub.f32 %v445_v50, %v457_v57  ;;  %v3250_v48 = vld [vmem:[#allocation6 + $0xa0] ss:$8 sps:$4 sm:$0xff]   ;;  %v3253_v50 = vld [vmem:[#allocation6 + $0xb0] ss:$8 sps:$4 sm:$0xff]  }
 0x238   :  { %v3265_v57 = vld [vmem:[#allocation6 + $0xf4] ss:$8 sps:$4 sm:$0x1f]  }
 0x239   :  { %v460_v60 = vmul.f32 %v458_v58, %v458_v58  ;;  %v461_v61 = vmul.f32 %v459_v59, %v459_v59 }
 0x23b   :  { %v462_v62 = vsel %vm449_vm3, %v460_v60, 0.0  ;;  %v463_v63 = vsel %vm181_vm0, %v461_v61, 0.0  ;;  %v3270_v60 = vld [vmem:[#allocation4 + $0x4] ss:$8 sps:$4 sm:$0xff]  }
 0x23c   :  { %v464_v0 = vadd.f32 %v463_v63, %v462_v62 }
 0x23e   :  { %465 = vadd.xlane.f32.xlu0 %v464_v0 }
 0x2cb   :  { %v466_v2 = vpop.xlane.xlu0 %465 }
 0x2cc   :  { %v467_v3 = vmul.f32 0.004, %v466_v2 }
 0x2ce   :  { %v468_v4 = vadd.f32 1e-05, %v467_v3 }
 0x2d0   :  { %3572 = vrsqrt.f32 %v468_v4 }
 0x2da   :  { %v3573_v9 = vpop.eup %3572 }
 0x2db   :  { %v471_v10 = vmul.f32 %v3573_v9, %v459_v59  ;;  %v470_v12 = vmul.f32 %v3573_v9, %v458_v58  ;;  %v3267_v58 = vld [vmem:[#allocation6 + $0xf0] ss:$8 sps:$4 sm:$0x1f]  }
 0x2dc   :  { %v848_v59 = vsel %vm401_vm2, %v3267_v58, 0 }
 0x2dd   :  { %v485_v14 = vmul.f32 %v481_v7, %v471_v10  ;;  %v484_v15 = vmul.f32 %v477_v8, %v470_v12  ;;  %v3268_v10 = vld [vmem:[#allocation4] ss:$8 sps:$4 sm:$0xff]   ;;  %v3271_v12 = vld [vmem:[#allocation4 + $0x10] ss:$8 sps:$4 sm:$0xff]  }
 0x2df   :  { %v499_v16 = vadd.f32 %v495_v11, %v485_v14  ;;  %v498_v17 = vadd.f32 %v491_v13, %v484_v15  ;;  %v3273_v11 = vld [vmem:[#allocation4 + $0x14] ss:$8 sps:$4 sm:$0xff]   ;;  %v3276_v13 = vld [vmem:[#allocation4 + $0x24] ss:$8 sps:$4 sm:$0xff]   ;;  %v3274_v14 = vld [vmem:[#allocation4 + $0x20] ss:$8 sps:$4 sm:$0xff]  }
 0x2e0   :  { %v3279_v15 = vld [vmem:[#allocation4 + $0x34] ss:$8 sps:$4 sm:$0xff]  }
 0x2e1   :  { %v501_v18 = vmax.f32 %v499_v16, 0.0  ;;  %v500_v19 = vmax.f32 %v498_v17, 0.0  ;;  %v3277_v16 = vld [vmem:[#allocation4 + $0x30] ss:$8 sps:$4 sm:$0xff]   ;;  %v3282_v17 = vld [vmem:[#allocation4 + $0x44] ss:$8 sps:$4 sm:$0xff]  }
 0x2e3   :  { %v4138_v20 = vpack.c.bf16 %v501_v18, %v501_v18  ;;  %v4140_v21 = vpack.c.bf16 %v500_v19, %v500_v19  ;;  %v3280_v18 = vld [vmem:[#allocation4 + $0x40] ss:$8 sps:$4 sm:$0xff]   ;;  %v3285_v19 = vld [vmem:[#allocation4 + $0x54] ss:$8 sps:$4 sm:$0xff]  }
 0x2e5   :  { %2869 = vmatprep.subr.msk.bf16.mxu1 %vm515_vm4, %v4138_v20  ;;  %v517_v22 = vsel %vm515_vm4, %v4140_v21, 0 }
 0x2e6   :  { %523 = vmatpush1.bf16.msra.mxu1 %v517_v22 }
 0x2e7   :  { %2872 = vmatprep.subr.msk.bf16.mxu1 %vm515_vm4, %v4138_v20 }
 0x2e9   :  { %2870 = vmatmul.mubr.msk.bf16.vlgmr.msra.gmra.mrb[0].mxu1 %vm511_vm5, %v3218_v23  ;;  %v3288_v23 = vld [vmem:[#allocation4 + $0x64] ss:$8 sps:$4 sm:$0xff]  }
 0x2ea   :  { %578 = vmatpush1.bf16.msra.mxu1 %v517_v22  ;;  %609 = vmatprep.mubr.bf16.mxu1 %v3746_v1  ;;  %v3283_v22 = vld [vmem:[#allocation4 + $0x50] ss:$8 sps:$4 sm:$0xff]  }
 0x2eb   :  { %853 = vmatprep.subr.bf16.mxu1 %v3222_v24  ;;  %v3286_v24 = vld [vmem:[#allocation4 + $0x60] ss:$8 sps:$4 sm:$0xff]  }
 0x2f1   :  { %2873 = vmatmul.mubr.msk.bf16.vlgmr.msra.gmra.mrb[4].mxu1 %vm511_vm5, %v3219_v25  ;;  %v3291_v25 = vld [vmem:[#allocation4 + $0x74] ss:$8 sps:$4 sm:$0xff]  }
 0x2f2   :  { %854 = vmatpush1.bf16.msra.mxu1 %v3220_v26  ;;  %v3289_v26 = vld [vmem:[#allocation4 + $0x70] ss:$8 sps:$4 sm:$0xff]  }
 0x2f3   :  { %855 = vmatprep.subr.bf16.mxu1 %v3225_v27  ;;  %v3294_v27 = vld [vmem:[#allocation4 + $0x84] ss:$8 sps:$4 sm:$0xff]  }
 0x2f6   :  { %856 = vmatpush1.bf16.msra.mxu1 %v3223_v28  ;;  %v3292_v28 = vld [vmem:[#allocation4 + $0x80] ss:$8 sps:$4 sm:$0xff]  }
 0x2f7   :  { %857 = vmatprep.subr.bf16.mxu1 %v3228_v29  ;;  %v3297_v29 = vld [vmem:[#allocation4 + $0x94] ss:$8 sps:$4 sm:$0xff]  }
 0x2fa   :  { %858 = vmatpush1.bf16.msra.mxu1 %v3226_v30  ;;  %v3295_v30 = vld [vmem:[#allocation4 + $0x90] ss:$8 sps:$4 sm:$0xff]  }
 0x2fb   :  { %859 = vmatprep.subr.bf16.mxu1 %v3231_v31  ;;  %v3300_v31 = vld [vmem:[#allocation4 + $0xa4] ss:$8 sps:$4 sm:$0xff]  }
 0x2fe   :  { %860 = vmatpush1.bf16.msra.mxu1 %v3229_v32  ;;  %v3298_v32 = vld [vmem:[#allocation4 + $0xa0] ss:$8 sps:$4 sm:$0xff]  }
 0x2ff   :  { %861 = vmatprep.subr.bf16.mxu1 %v3234_v33  ;;  %v3303_v33 = vld [vmem:[#allocation4 + $0xb4] ss:$8 sps:$4 sm:$0xff]  }
 0x302   :  { %862 = vmatpush1.bf16.msra.mxu1 %v3232_v34  ;;  %v3301_v34 = vld [vmem:[#allocation4 + $0xb0] ss:$8 sps:$4 sm:$0xff]  }
 0x303   :  { %863 = vmatprep.subr.bf16.mxu1 %v3237_v35  ;;  %v3306_v35 = vld [vmem:[#allocation4 + $0xc4] ss:$8 sps:$4 sm:$0xff]  }
 0x306   :  { %864 = vmatpush1.bf16.msra.mxu1 %v3235_v36  ;;  %v3304_v36 = vld [vmem:[#allocation4 + $0xc0] ss:$8 sps:$4 sm:$0xff]  }
 0x307   :  { %865 = vmatprep.subr.bf16.mxu1 %v3240_v37  ;;  %v3309_v37 = vld [vmem:[#allocation4 + $0xd4] ss:$8 sps:$4 sm:$0xff]  }
 0x30a   :  { %866 = vmatpush1.bf16.msra.mxu1 %v3238_v38  ;;  %v3307_v38 = vld [vmem:[#allocation4 + $0xd0] ss:$8 sps:$4 sm:$0xff]  }
 0x30b   :  { %867 = vmatprep.subr.bf16.mxu1 %v3243_v39  ;;  %v3312_v39 = vld [vmem:[#allocation4 + $0xe4] ss:$8 sps:$4 sm:$0xff]  }
 0x30e   :  { %868 = vmatpush1.bf16.msra.mxu1 %v3241_v40  ;;  %v3310_v40 = vld [vmem:[#allocation4 + $0xe0] ss:$8 sps:$4 sm:$0xff]  }
 0x30f   :  { %869 = vmatprep.subr.bf16.mxu1 %v3246_v41  ;;  %v3313_v41 = vld [vmem:[#allocation4 + $0xf4] ss:$8 sps:$4 sm:$0x1f]  }
 0x312   :  { %870 = vmatpush1.bf16.msra.mxu1 %v3244_v43  ;;  %v3315_v43 = vld [vmem:[#allocation4 + $0xf0] ss:$8 sps:$4 sm:$0x1f]  }
 0x313   :  { %871 = vmatprep.subr.bf16.mxu1 %v3249_v45  ;;  %v1058_v45 = vsel %vm401_vm2, %v3315_v43, 0  ;;  %v3352_v43 = vld [vmem:[#allocation8 + $0xc0] ss:$8 sps:$4 sm:$0xff]  }
 0x316   :  { %872 = vmatpush1.bf16.msra.mxu1 %v3247_v46  ;;  %v1106_v46 = vld [vmem:[%s4383_s2] sm:$0x3] }
 0x317   :  { %873 = vmatprep.subr.bf16.mxu1 %v3252_v47  ;;  %v1115_v47 = vrot.slane %v1106_v46, %v4117_v44 }
 0x31a   :  { %874 = vmatpush1.bf16.msra.mxu1 %v3250_v48  ;;  %v1111_v48 = vrot.slane %v1106_v46, %v4112_v42  ;;  %v3355_v46 = vld [vmem:[#allocation8 + $0xd0] ss:$8 sps:$4 sm:$0xff]  }
 0x31b   :  { %875 = vmatprep.subr.bf16.mxu1 %v3255_v49 }
 0x31e   :  { %876 = vmatpush1.bf16.msra.mxu1 %v3253_v50 }
 0x31f   :  { %877 = vmatprep.subr.bf16.mxu1 %v3258_v51 }
 0x322   :  { %878 = vmatpush1.bf16.msra.mxu1 %v3256_v52 }
 0x323   :  { %879 = vmatprep.subr.bf16.mxu1 %v3261_v53 }
 0x326   :  { %880 = vmatpush1.bf16.msra.mxu1 %v3259_v54 }
 0x327   :  { %881 = vmatprep.subr.bf16.mxu1 %v3264_v56 }
 0x32a   :  { %882 = vmatpush1.bf16.msra.mxu1 %v3262_v55 }
 0x32b   :  { %2906 = vmatprep.subr.msk.bf16.mxu1 %vm401_vm2, %v3265_v57 }
 0x32e   :  { %884 = vmatpush1.bf16.msra.mxu1 %v848_v59 }
 0x32f   :  { %1063 = vmatprep.subr.bf16.mxu1 %v3270_v60 }
 0x3bc   :  { %v4154_v61 = vpop.f32.mrb[0].mxu1 }
 0x3bd   :  { %v558_v62 = vpop.f32.mrb[1].mxu1 }
 0x3be   :  { %v4156_v63 = vpop.f32.mrb[2].mxu1 }
 0x3bf   :  { %v565_v0 = vpack.c.bf16 %v4156_v63, %v4154_v61  ;;  %v562_v2 = vpop.f32.mrb[3].mxu1  ;;  %v3316_v61 = vld [vmem:[#allocation8] ss:$8 sps:$4 sm:$0xff]   ;;  %v3321_v63 = vld [vmem:[#allocation8 + $0x14] ss:$8 sps:$4 sm:$0xff]  }
 0x3c0   :  { %v566_v3 = vpack.c.bf16 %v562_v2, %v558_v62  ;;  %v3318_v62 = vld [vmem:[#allocation8 + $0x4] ss:$8 sps:$4 sm:$0xff]  }
 0x3c1   :  { %1411 = vmatprep.subr.bf16.mxu0 %v3318_v62  ;;  %v3324_v2 = vld [vmem:[#allocation8 + $0x24] ss:$8 sps:$4 sm:$0xff]  }
 0x3c2   :  { %1412 = vmatpush1.bf16.msra.mxu0 %v3316_v61  ;;  %v1178_v62 = vld [vmem:[%s4338_s13] sm:$0x3] }
 0x3c3   :  { %1413 = vmatprep.subr.bf16.mxu0 %v3321_v63 }
 0x3c4   :  { %v611_v4 = vpop.f32.mrb[4].mxu1 }
 0x3c5   :  { %v613_v5 = vpop.f32.mrb[5].mxu1 }
 0x3c6   :  { %v615_v6 = vpop.f32.mrb[6].mxu1 }
 0x3c7   :  { %v620_v7 = vpack.c.bf16 %v615_v6, %v611_v4  ;;  %v617_v8 = vpop.f32.mrb[7].mxu1  ;;  %v3327_v4 = vld [vmem:[#allocation8 + $0x34] ss:$8 sps:$4 sm:$0xff]   ;;  %v3330_v6 = vld [vmem:[#allocation8 + $0x44] ss:$8 sps:$4 sm:$0xff]  }
 0x3c8   :  { %v621_v9 = vpack.c.bf16 %v617_v8, %v613_v5  ;;  %v3325_v5 = vld [vmem:[#allocation8 + $0x30] ss:$8 sps:$4 sm:$0xff]   ;;  %v3333_v8 = vld [vmem:[#allocation8 + $0x54] ss:$8 sps:$4 sm:$0xff]  }
 0x3ca   :  { %2907 = vmatprep.mubr.msk.bf16.mxu1 %vm397_vm1, %v621_v9  ;;  %v3331_v9 = vld [vmem:[#allocation8 + $0x50] ss:$8 sps:$4 sm:$0xff]  }
 0x3cb   :  { %886 = vmatmul.mubr.bf16.vlgmr.msra.gmra.mrb[8].mxu1 %v620_v7  ;;  %v3328_v7 = vld [vmem:[#allocation8 + $0x40] ss:$8 sps:$4 sm:$0xff]  }
 0x3cc   :  { %1064 = vmatpush1.bf16.msra.mxu1 %v3268_v10  ;;  %2941 = vmatprep.mubr.msk.bf16.mxu1 %vm397_vm1, %v566_v3  ;;  %v3322_v3 = vld [vmem:[#allocation8 + $0x20] ss:$8 sps:$4 sm:$0xff]   ;;  %v3336_v10 = vld [vmem:[#allocation8 + $0x64] ss:$8 sps:$4 sm:$0xff]  }
 0x3cd   :  { %1065 = vmatprep.subr.bf16.mxu1 %v3273_v11  ;;  %v3334_v11 = vld [vmem:[#allocation8 + $0x60] ss:$8 sps:$4 sm:$0xff]  }
 0x3d0   :  { %1066 = vmatpush1.bf16.msra.mxu1 %v3271_v12  ;;  %v3339_v12 = vld [vmem:[#allocation8 + $0x74] ss:$8 sps:$4 sm:$0xff]  }
 0x3d1   :  { %1067 = vmatprep.subr.bf16.mxu1 %v3276_v13  ;;  %v3337_v13 = vld [vmem:[#allocation8 + $0x70] ss:$8 sps:$4 sm:$0xff]  }
 0x3d4   :  { %1068 = vmatpush1.bf16.msra.mxu1 %v3274_v14  ;;  %v3342_v14 = vld [vmem:[#allocation8 + $0x84] ss:$8 sps:$4 sm:$0xff]  }
 0x3d5   :  { %1069 = vmatprep.subr.bf16.mxu1 %v3279_v15  ;;  %v3340_v15 = vld [vmem:[#allocation8 + $0x80] ss:$8 sps:$4 sm:$0xff]  }
 0x3d8   :  { %1070 = vmatpush1.bf16.msra.mxu1 %v3277_v16 }
 0x3d9   :  { %1071 = vmatprep.subr.bf16.mxu1 %v3282_v17 }
 0x3dc   :  { %1072 = vmatpush1.bf16.msra.mxu1 %v3280_v18 }
 0x3dd   :  { %1073 = vmatprep.subr.bf16.mxu1 %v3285_v19 }
 0x3e0   :  { %1074 = vmatpush1.bf16.msra.mxu1 %v3283_v22 }
 0x3e1   :  { %1075 = vmatprep.subr.bf16.mxu1 %v3288_v23 }
 0x3e4   :  { %1076 = vmatpush1.bf16.msra.mxu1 %v3286_v24 }
 0x3e5   :  { %1077 = vmatprep.subr.bf16.mxu1 %v3291_v25 }
 0x3e8   :  { %1078 = vmatpush1.bf16.msra.mxu1 %v3289_v26 }
 0x3e9   :  { %1079 = vmatprep.subr.bf16.mxu1 %v3294_v27 }
 0x3ec   :  { %1080 = vmatpush1.bf16.msra.mxu1 %v3292_v28 }
 0x3ed   :  { %1081 = vmatprep.subr.bf16.mxu1 %v3297_v29 }
 0x3f0   :  { %1082 = vmatpush1.bf16.msra.mxu1 %v3295_v30 }
 0x3f1   :  { %1083 = vmatprep.subr.bf16.mxu1 %v3300_v31 }
 0x3f4   :  { %1084 = vmatpush1.bf16.msra.mxu1 %v3298_v32 }
 0x3f5   :  { %1085 = vmatprep.subr.bf16.mxu1 %v3303_v33 }
 0x3f8   :  { %1086 = vmatpush1.bf16.msra.mxu1 %v3301_v34 }
 0x3f9   :  { %1087 = vmatprep.subr.bf16.mxu1 %v3306_v35  ;;  %v3345_v35 = vld [vmem:[#allocation8 + $0x94] ss:$8 sps:$4 sm:$0xff]  }
 0x3fc   :  { %1088 = vmatpush1.bf16.msra.mxu1 %v3304_v36  ;;  %v3343_v36 = vld [vmem:[#allocation8 + $0x90] ss:$8 sps:$4 sm:$0xff]  }
 0x3fd   :  { %1089 = vmatprep.subr.bf16.mxu1 %v3309_v37  ;;  %v3348_v37 = vld [vmem:[#allocation8 + $0xa4] ss:$8 sps:$4 sm:$0xff]  }
 0x400   :  { %1090 = vmatpush1.bf16.msra.mxu1 %v3307_v38  ;;  %v3346_v38 = vld [vmem:[#allocation8 + $0xa0] ss:$8 sps:$4 sm:$0xff]  }
 0x401   :  { %1091 = vmatprep.subr.bf16.mxu1 %v3312_v39  ;;  %v3351_v39 = vld [vmem:[#allocation8 + $0xb4] ss:$8 sps:$4 sm:$0xff]  }
 0x404   :  { %1092 = vmatpush1.bf16.msra.mxu1 %v3310_v40  ;;  %v3349_v40 = vld [vmem:[#allocation8 + $0xb0] ss:$8 sps:$4 sm:$0xff]  }
 0x405   :  { %2940 = vmatprep.subr.msk.bf16.mxu1 %vm401_vm2, %v3313_v41  ;;  %v3354_v41 = vld [vmem:[#allocation8 + $0xc4] ss:$8 sps:$4 sm:$0xff]  }
 0x408   :  { %1094 = vmatpush1.bf16.msra.mxu1 %v1058_v45  ;;  %v3357_v45 = vld [vmem:[#allocation8 + $0xd4] ss:$8 sps:$4 sm:$0xff]  }
 0x40b   :  { %1096 = vmatmul.mubr.bf16.vlgmr.msra.gmra.mrb[8].mxu1 %v565_v0  ;;  %v3319_v0 = vld [vmem:[#allocation8 + $0x10] ss:$8 sps:$4 sm:$0xff]  }
 0x40c   :  { %1850 = vmatprep.mubr.bf16.mxu1 %v3746_v1  ;;  %1414 = vmatpush1.bf16.msra.mxu0 %v3319_v0 }
 0x40d   :  { %1415 = vmatprep.subr.bf16.mxu0 %v3324_v2 }
 0x410   :  { %1416 = vmatpush1.bf16.msra.mxu0 %v3322_v3  ;;  %v1187_v3 = vrot.slane %v1178_v62, %v4117_v44 }
 0x411   :  { %1417 = vmatprep.subr.bf16.mxu0 %v3327_v4 }
 0x414   :  { %1418 = vmatpush1.bf16.msra.mxu0 %v3325_v5  ;;  %v1183_v5 = vrot.slane %v1178_v62, %v4112_v42  ;;  %v3418_v62 = vld [vmem:[#allocation9 + $0xc4] ss:$8 sps:$4 sm:$0xff]  }
 0x415   :  { %1419 = vmatprep.subr.bf16.mxu0 %v3330_v6 }
 0x418   :  { %1420 = vmatpush1.bf16.msra.mxu0 %v3328_v7 }
 0x419   :  { %1421 = vmatprep.subr.bf16.mxu0 %v3333_v8 }
 0x41c   :  { %1422 = vmatpush1.bf16.msra.mxu0 %v3331_v9 }
 0x41d   :  { %1423 = vmatprep.subr.bf16.mxu0 %v3336_v10 }
 0x420   :  { %1424 = vmatpush1.bf16.msra.mxu0 %v3334_v11 }
 0x421   :  { %1425 = vmatprep.subr.bf16.mxu0 %v3339_v12 }
 0x424   :  { %1426 = vmatpush1.bf16.msra.mxu0 %v3337_v13 }
 0x425   :  { %1427 = vmatprep.subr.bf16.mxu0 %v3342_v14 }
 0x428   :  { %1428 = vmatpush1.bf16.msra.mxu0 %v3340_v15 }
 0x429   :  { %1429 = vmatprep.subr.bf16.mxu0 %v3345_v35  ;;  %v3377_v35 = vld [vmem:[%s4343_s18 + $0x30] sm:$0xff]  }
 0x42c   :  { %1430 = vmatpush1.bf16.msra.mxu0 %v3343_v36  ;;  %v3378_v36 = vld [vmem:[%s4343_s18 + $0x78] sm:$0x1f]  }
 0x42d   :  { %1431 = vmatprep.subr.bf16.mxu0 %v3348_v37  ;;  %v3379_v37 = vld [vmem:[%s4343_s18 + $0x38] sm:$0xff]  }
 0x430   :  { %1432 = vmatpush1.bf16.msra.mxu0 %v3346_v38  ;;  %v3382_v38 = vld [vmem:[#allocation9 + $0x4] ss:$8 sps:$4 sm:$0xff]  }
 0x431   :  { %1433 = vmatprep.subr.bf16.mxu0 %v3351_v39  ;;  %v3380_v39 = vld [vmem:[#allocation9] ss:$8 sps:$4 sm:$0xff]  }
 0x434   :  { %1434 = vmatpush1.bf16.msra.mxu0 %v3349_v40  ;;  %v3385_v40 = vld [vmem:[#allocation9 + $0x14] ss:$8 sps:$4 sm:$0xff]  }
 0x435   :  { %1435 = vmatprep.subr.bf16.mxu0 %v3354_v41  ;;  %v3383_v41 = vld [vmem:[#allocation9 + $0x10] ss:$8 sps:$4 sm:$0xff]  }
 0x438   :  { %1436 = vmatpush1.bf16.msra.mxu0 %v3352_v43  ;;  %v3388_v43 = vld [vmem:[#allocation9 + $0x24] ss:$8 sps:$4 sm:$0xff]  }
 0x439   :  { %1437 = vmatprep.subr.bf16.mxu0 %v3357_v45  ;;  %v3386_v45 = vld [vmem:[#allocation9 + $0x20] ss:$8 sps:$4 sm:$0xff]  }
 0x43c   :  { %1438 = vmatpush1.bf16.msra.mxu0 %v3355_v46  ;;  %v3391_v46 = vld [vmem:[#allocation9 + $0x34] ss:$8 sps:$4 sm:$0xff]  }
 0x4de   :  { %v1097_v49 = vpop.f32.mrb[8].mxu1 }
 0x4df   :  { %v1099_v50 = vpop.f32.mrb[9].mxu1  ;;  %v1118_v53 = vadd.f32 %v1111_v48, %v1097_v49  ;;  %v3361_v49 = vld [vmem:[#allocation8 + $0xf4] ss:$8 sps:$4 sm:$0x1f]  }
 0x4e0   :  { %v1119_v51 = vadd.f32 %v1115_v47, %v1099_v50  ;;  %v1101_v52 = vpop.f32.mrb[10].mxu1  ;;  %v3363_v50 = vld [vmem:[#allocation8 + $0xf0] ss:$8 sps:$4 sm:$0x1f]  }
 0x4e1   :  { %v1120_v54 = vadd.f32 %v1111_v48, %v1101_v52  ;;  %v1103_v55 = vpop.f32.mrb[11].mxu1  ;;  %v3360_v48 = vld [vmem:[#allocation8 + $0xe4] ss:$8 sps:$4 sm:$0xff]  }
 0x4e2   :  { %v1121_v56 = vadd.f32 %v1115_v47, %v1103_v55  ;;  %v1122_v1 = vsel %vm397_vm1, %v1119_v51, 0.0  ;;  %v3358_v47 = vld [vmem:[#allocation8 + $0xe0] ss:$8 sps:$4 sm:$0xff]   ;;  %1439 = vmatprep.subr.bf16.mxu0 %v3360_v48  ;;  %v3364_v52 = vld [vmem:[%s4343_s18 + $0x40] sm:$0xff]  }
 0x4e3   :  { %v1123_v57 = vadd.f32 %v1122_v1, %v1118_v53  ;;  %v1127_v58 = vsel %vm1126_vm6, %v1120_v54, 0.0  ;;  %1440 = vmatpush1.bf16.msra.mxu0 %v3358_v47  ;;  %v3389_v47 = vld [vmem:[#allocation9 + $0x30] ss:$8 sps:$4 sm:$0xff]   ;;  %v3394_v48 = vld [vmem:[#allocation9 + $0x44] ss:$8 sps:$4 sm:$0xff]  }
 0x4e4   :  { %v1129_v59 = vsel %vm1128_vm7, %v1121_v56, 0.0  ;;  %2974 = vmatprep.subr.msk.bf16.mxu0 %vm401_vm2, %v3361_v49  ;;  %v3392_v49 = vld [vmem:[#allocation9 + $0x40] ss:$8 sps:$4 sm:$0xff]  }
 0x4e5   :  { %1124 = vadd.xlane.f32.xlu1 %v1123_v57  ;;  %v1130_v60 = vadd.f32 %v1129_v59, %v1127_v58  ;;  %v1162_v58 = vld [vmem:[%s4384_s7] sm:$0x3]  ;;  %s4386_s7 = sld [smem:[#allocation18_spill]] }
 0x4e6   :  { %v1171_v59 = vrot.slane %v1162_v58, %v4117_v44 }
 0x4e9   :  { %1131 = vadd.xlane.f32.xlu1 %v1130_v60  ;;  %v1167_v60 = vrot.slane %v1162_v58, %v4112_v42  ;;  %v3412_v58 = vld [vmem:[#allocation9 + $0xa4] ss:$8 sps:$4 sm:$0xff]  }
 0x572   :  { %v1125_v16 = vpop.xlane.xlu1 %1124 }
 0x573   :  { %v1133_v17 = vmul.f32 0.004, %v1125_v16 }
 0x575   :  { %v1135_v18 = vsub.f32 %v1118_v53, %v1133_v17  ;;  %v1136_v19 = vsub.f32 %v1119_v51, %v1133_v17  ;;  %v1406_v51 = vsel %vm401_vm2, %v3363_v50, 0  ;;  %v3397_v50 = vld [vmem:[#allocation9 + $0x54] ss:$8 sps:$4 sm:$0xff]  }
 0x576   :  { %v1132_v22 = vpop.xlane.xlu1 %1131  ;;  %1442 = vmatpush1.bf16.msra.mxu0 %v1406_v51  ;;  %v3395_v51 = vld [vmem:[#allocation9 + $0x50] ss:$8 sps:$4 sm:$0xff]  }
 0x577   :  { %v1134_v23 = vmul.f32 0.004, %v1132_v22  ;;  %v1139_v24 = vmul.f32 %v1135_v18, %v1135_v18  ;;  %v1140_v25 = vmul.f32 %v1136_v19, %v1136_v19  ;;  %3132 = vmatprep.subr.bf16.mxu0 %v3364_v52  ;;  %v3400_v52 = vld [vmem:[#allocation9 + $0x64] ss:$8 sps:$4 sm:$0xff]  }
 0x579   :  { %v1137_v26 = vsub.f32 %v1120_v54, %v1134_v23  ;;  %v1138_v27 = vsub.f32 %v1121_v56, %v1134_v23  ;;  %v1143_v28 = vsel %vm397_vm1, %v1140_v25, 0.0  ;;  %v3365_v23 = vld [vmem:[%s4343_s18] sm:$0xff]   ;;  %v3367_v25 = vld [vmem:[%s4343_s18 + $0x8] sm:$0xff]  }
 0x57a   :  { %v1144_v29 = vadd.f32 %v1143_v28, %v1139_v24  ;;  %v3366_v24 = vld [vmem:[%s4343_s18 + $0x48] sm:$0xff]   ;;  %v3370_v28 = vld [vmem:[%s4343_s18 + $0x58] sm:$0xff]  }
 0x57b   :  { %v1141_v30 = vmul.f32 %v1137_v26, %v1137_v26  ;;  %v1142_v31 = vmul.f32 %v1138_v27, %v1138_v27 }
 0x57c   :  { %1145 = vadd.xlane.f32.xlu0 %v1144_v29  ;;  %v3371_v29 = vld [vmem:[%s4343_s18 + $0x18] sm:$0xff]  }
 0x57d   :  { %v1147_v32 = vsel %vm1126_vm6, %v1141_v30, 0.0  ;;  %v1148_v33 = vsel %vm1128_vm7, %v1142_v31, 0.0  ;;  %v3372_v30 = vld [vmem:[%s4343_s18 + $0x60] sm:$0xff]  }
 0x57e   :  { %v1149_v34 = vadd.f32 %v1148_v33, %v1147_v32  ;;  %v3373_v31 = vld [vmem:[%s4343_s18 + $0x20] sm:$0xff]   ;;  %v3374_v32 = vld [vmem:[%s4343_s18 + $0x68] sm:$0xff]  }
 0x57f   :  { %v3375_v33 = vld [vmem:[%s4343_s18 + $0x28] sm:$0xff]  }
 0x580   :  { %1150 = vadd.xlane.f32.xlu1 %v1149_v34  ;;  %v3376_v34 = vld [vmem:[%s4343_s18 + $0x70] sm:$0xff]  }
 0x609   :  { %v1146_v53 = vpop.xlane.xlu0 %1145 }
 0x60a   :  { %v1152_v54 = vmul.f32 0.004, %v1146_v53  ;;  %v3403_v53 = vld [vmem:[#allocation9 + $0x74] ss:$8 sps:$4 sm:$0xff]  }
 0x60c   :  { %v1154_v55 = vadd.f32 1e-05, %v1152_v54  ;;  %v3401_v54 = vld [vmem:[#allocation9 + $0x70] ss:$8 sps:$4 sm:$0xff]  }
 0x60d   :  { %v1151_v56 = vpop.xlane.xlu1 %1150 }
 0x60e   :  { %3574 = vrsqrt.f32 %v1154_v55  ;;  %v1153_v1 = vmul.f32 0.004, %v1151_v56  ;;  %v3406_v55 = vld [vmem:[#allocation9 + $0x84] ss:$8 sps:$4 sm:$0xff]   ;;  %v3404_v56 = vld [vmem:[#allocation9 + $0x80] ss:$8 sps:$4 sm:$0xff]  }
 0x610   :  { %v1155_v57 = vadd.f32 1e-05, %v1153_v1  ;;  %v3409_v1 = vld [vmem:[#allocation9 + $0x94] ss:$8 sps:$4 sm:$0xff]  }
 0x612   :  { %3576 = vrsqrt.f32 %v1155_v57  ;;  %v3407_v57 = vld [vmem:[#allocation9 + $0x90] ss:$8 sps:$4 sm:$0xff]  }
 0x618   :  { %v3575_v61 = vpop.eup %3574 }
 0x619   :  { %v1158_v63 = vmul.f32 %v3575_v61, %v1135_v18  ;;  %v1159_v0 = vmul.f32 %v3575_v61, %v1136_v19  ;;  %v3413_v61 = vld [vmem:[#allocation9 + $0xb0] ss:$8 sps:$4 sm:$0xff]  }
 0x61b   :  { %v1175_v2 = vmul.f32 %v1171_v59, %v1159_v0  ;;  %v1174_v4 = vmul.f32 %v1167_v60, %v1158_v63  ;;  %v3416_v63 = vld [vmem:[#allocation9 + $0xc0] ss:$8 sps:$4 sm:$0xff]   ;;  %v3421_v0 = vld [vmem:[#allocation9 + $0xd4] ss:$8 sps:$4 sm:$0xff]  }
 0x61c   :  { %v3577_v6 = vpop.eup %3576 }
 0x61d   :  { %v1160_v7 = vmul.f32 %v3577_v6, %v1137_v26  ;;  %v1161_v8 = vmul.f32 %v3577_v6, %v1138_v27  ;;  %v1191_v10 = vadd.f32 %v1187_v3, %v1175_v2  ;;  %v1190_v12 = vadd.f32 %v1183_v5, %v1174_v4  ;;  %v3368_v26 = vld [vmem:[%s4343_s18 + $0x50] sm:$0xff]   ;;  %v3419_v2 = vld [vmem:[#allocation9 + $0xd0] ss:$8 sps:$4 sm:$0xff]  }
 0x61e   :  { %v3369_v27 = vld [vmem:[%s4343_s18 + $0x10] sm:$0xff]   ;;  %v3427_v6 = vld [vmem:[#allocation9 + $0xf0] ss:$8 sps:$4 sm:$0x1f]   ;;  %s4387_s18 = sld [smem:[#allocation31_spill]] }
 0x61f   :  { %v1177_v9 = vmul.f32 %v1171_v59, %v1161_v8  ;;  %v1176_v11 = vmul.f32 %v1167_v60, %v1160_v7  ;;  %v1195_v15 = vmax.f32 %v1191_v10, 0.0  ;;  %v1194_v17 = vmax.f32 %v1190_v12, 0.0  ;;  %v3410_v59 = vld [vmem:[#allocation9 + $0xa0] ss:$8 sps:$4 sm:$0xff]   ;;  %v3415_v60 = vld [vmem:[#allocation9 + $0xb4] ss:$8 sps:$4 sm:$0xff]  }
 0x620   :  { %v3422_v4 = vld [vmem:[#allocation9 + $0xe0] ss:$8 sps:$4 sm:$0xff]   ;;  %v2294_v7 = vsel %vm401_vm2, %v3427_v6, 0 }
 0x621   :  { %v1193_v13 = vadd.f32 %v1187_v3, %v1177_v9  ;;  %v1192_v14 = vadd.f32 %v1183_v5, %v1176_v11  ;;  %v3424_v3 = vld [vmem:[#allocation9 + $0xe4] ss:$8 sps:$4 sm:$0xff]   ;;  %v3425_v5 = vld [vmem:[#allocation9 + $0xf4] ss:$8 sps:$4 sm:$0x1f]  }
 0x623   :  { %v1197_v16 = vmax.f32 %v1193_v13, 0.0  ;;  %v1196_v18 = vmax.f32 %v1192_v14, 0.0  ;;  %v2976_v14 = vld [vmem:[%s4344_s19] ss:$0 sm:$0xff] }
 0x625   :  { %v1199_v19 = vpack.c.bf16 %v1197_v16, %v1195_v15  ;;  %v1198_v22 = vpack.c.bf16 %v1196_v18, %v1194_v17 }
 0x627   :  { %2975 = vmatprep.mubr.msk.bf16.mxu0 %vm397_vm1, %v1199_v19 }
 0x628   :  { %1444 = vmatmul.mubr.bf16.vlgmr.msra.gmra.mrb[4].mxu0 %v1198_v22 }
 0x629   :  { %3133 = vmatpush3.bf16.msra.mxu0 %v3365_v23  ;;  %2993 = vmatprep.mubr.msk.bf16.mxu0 %vm397_vm1, %v1199_v19 }
 0x62a   :  { %3134 = vmatprep.subr.bf16.mxu0 %v3366_v24 }
 0x62d   :  { %3135 = vmatpush3.bf16.msra.mxu0 %v3367_v25 }
 0x62e   :  { %3136 = vmatprep.subr.bf16.mxu0 %v3368_v26 }
 0x631   :  { %3137 = vmatpush3.bf16.msra.mxu0 %v3369_v27 }
 0x632   :  { %3138 = vmatprep.subr.bf16.mxu0 %v3370_v28  ;;  %v1232_v28 = vld [vmem:[%s4340_s15] sm:$0x3] }
 0x635   :  { %3139 = vmatpush3.bf16.msra.mxu0 %v3371_v29  ;;  %v1241_v29 = vrot.slane %v1232_v28, %v4117_v44 }
 0x636   :  { %3140 = vmatprep.subr.bf16.mxu0 %v3372_v30 }
 0x639   :  { %3141 = vmatpush3.bf16.msra.mxu0 %v3373_v31 }
 0x63a   :  { %3142 = vmatprep.subr.bf16.mxu0 %v3374_v32 }
 0x63d   :  { %3143 = vmatpush3.bf16.msra.mxu0 %v3375_v33  ;;  %v1237_v33 = vrot.slane %v1232_v28, %v4112_v42 }
 0x63e   :  { %3144 = vmatprep.subr.bf16.mxu0 %v3376_v34 }
 0x641   :  { %3145 = vmatpush3.bf16.msra.mxu0 %v3377_v35 }
 0x642   :  { %3158 = vmatprep.subr.msk.bf16.mxu0 %vm401_vm2, %v3378_v36 }
 0x645   :  { %3147 = vmatpush3.bf16.msra.mxu0 %v3379_v37 }
 0x646   :  { %2299 = vmatprep.subr.bf16.mxu0 %v3382_v38 }
 0x648   :  { %1698 = vmatmul.mubr.bf16.vlgmr.msra.gmra.mrb[8].mxu0 %v1198_v22 }
 0x649   :  { %2300 = vmatpush1.bf16.msra.mxu0 %v3380_v39  ;;  %3067 = vmatprep.mubr.msk.bf16.mxu0 %vm397_vm1, %v4138_v20  ;;  %v3398_v20 = vld [vmem:[#allocation9 + $0x60] ss:$8 sps:$4 sm:$0xff]  }
 0x64a   :  { %2301 = vmatprep.subr.bf16.mxu0 %v3385_v40 }
 0x64d   :  { %2302 = vmatpush1.bf16.msra.mxu0 %v3383_v41 }
 0x64e   :  { %2303 = vmatprep.subr.bf16.mxu0 %v3388_v43 }
 0x651   :  { %2304 = vmatpush1.bf16.msra.mxu0 %v3386_v45 }
 0x652   :  { %2305 = vmatprep.subr.bf16.mxu0 %v3391_v46 }
 0x655   :  { %2306 = vmatpush1.bf16.msra.mxu0 %v3389_v47 }
 0x656   :  { %2307 = vmatprep.subr.bf16.mxu0 %v3394_v48 }
 0x659   :  { %2308 = vmatpush1.bf16.msra.mxu0 %v3392_v49 }
 0x65a   :  { %2309 = vmatprep.subr.bf16.mxu0 %v3397_v50 }
 0x65d   :  { %2310 = vmatpush1.bf16.msra.mxu0 %v3395_v51 }
 0x65e   :  { %2311 = vmatprep.subr.bf16.mxu0 %v3400_v52 }
 0x661   :  { %2312 = vmatpush1.bf16.msra.mxu0 %v3398_v20 }
 0x662   :  { %2313 = vmatprep.subr.bf16.mxu0 %v3403_v53 }
 0x665   :  { %2314 = vmatpush1.bf16.msra.mxu0 %v3401_v54 }
 0x666   :  { %2315 = vmatprep.subr.bf16.mxu0 %v3406_v55 }
 0x669   :  { %2316 = vmatpush1.bf16.msra.mxu0 %v3404_v56 }
 0x66a   :  { %2317 = vmatprep.subr.bf16.mxu0 %v3409_v1 }
 0x66d   :  { %2318 = vmatpush1.bf16.msra.mxu0 %v3407_v57  ;;  %v2994_v57 = vld [vmem:[%s4345_s20] ss:$0 sm:$0xff] }
 0x66e   :  { %2319 = vmatprep.subr.bf16.mxu0 %v3412_v58 }
 0x671   :  { %2320 = vmatpush1.bf16.msra.mxu0 %v3410_v59 }
 0x672   :  { %2321 = vmatprep.subr.bf16.mxu0 %v3415_v60  ;;  %v2995_v60 = vld [vmem:[%s4346_s21] ss:$0 sm:$0xff] }
 0x675   :  { %2322 = vmatpush1.bf16.msra.mxu0 %v3413_v61 }
 0x676   :  { %2323 = vmatprep.subr.bf16.mxu0 %v3418_v62 }
 0x679   :  { %2324 = vmatpush1.bf16.msra.mxu0 %v3416_v63 }
 0x67a   :  { %2325 = vmatprep.subr.bf16.mxu0 %v3421_v0 }
 0x67d   :  { %2326 = vmatpush1.bf16.msra.mxu0 %v3419_v2 }
 0x67e   :  { %2327 = vmatprep.subr.bf16.mxu0 %v3424_v3 }
 0x681   :  { %2328 = vmatpush1.bf16.msra.mxu0 %v3422_v4 }
 0x682   :  { %3066 = vmatprep.subr.msk.bf16.mxu0 %vm401_vm2, %v3425_v5 }
 0x685   :  { %2330 = vmatpush1.bf16.msra.mxu0 %v2294_v7 }
 0x688   :  { %2332 = vmatmul.mubr.bf16.vlgmr.msra.gmra.mrb[12].mxu0 %v4140_v21 }
 0x6fb   :  { %v1445_v8 = vpop.f32.mrb[4].mxu0 }
 0x6fc   :  { %v1447_v9 = vpop.f32.mrb[5].mxu0  ;;  %v1446_v46 = vadd.f32 %v1445_v8, %v1237_v33 }
 0x6fd   :  { %v1449_v10 = vpop.f32.mrb[6].mxu0  ;;  %v1448_v34 = vadd.f32 %v1447_v9, %v1241_v29 }
 0x6fe   :  { %v1451_v11 = vpop.f32.mrb[7].mxu0  ;;  %v1450_v37 = vadd.f32 %v1449_v10, %v1237_v33 }
 0x6ff   :  { %v1452_v38 = vadd.f32 %v1451_v11, %v1241_v29  ;;  %v1454_v45 = vsel %vm397_vm1, %v1448_v34, 0.0  ;;  %v2996_v11 = vld [vmem:[%s4347_s22] ss:$0 sm:$0xff] }
 0x700   :  { %v1458_v48 = vsel %vm1126_vm6, %v1450_v37, 0.0  ;;  %v1455_v50 = vadd.f32 %v1454_v45, %v1446_v46 }
 0x701   :  { %v1459_v49 = vsel %vm1128_vm7, %v1452_v38, 0.0 }
 0x702   :  { %v1460_v51 = vadd.f32 %v1459_v49, %v1458_v48 }
 0x71b   :  { %v3148_v12 = vpop.f32.mrb[8].mxu0 }
 0x71c   :  { %v3149_v13 = vpop.f32.mrb[9].mxu0 }
 0x71d   :  { %v3150_v15 = vadd.f32 %v3149_v13, %v3148_v12  ;;  %v3151_v16 = vpop.f32.mrb[10].mxu0 }
 0x71e   :  { %v3152_v17 = vpop.f32.mrb[11].mxu0 }
 0x71f   :  { %v3153_v18 = vadd.f32 %v3152_v17, %v3151_v16  ;;  %v1700_v19 = vadd.f32 %v3150_v15, %v2976_v14 }
 0x721   :  { %v1707_v22 = vsel %vm1706_vm8, %v1700_v19, 0.0  ;;  %v1703_v21 = vadd.f32 %v3153_v18, %v2976_v14 }
 0x722   :  { %1708 = vadd.xlane.f32.xlu0 %v1707_v22 }
 0x723   :  { %v1711_v23 = vsel %vm1710_vm9, %v1703_v21, 0.0 }
 0x724   :  { %1712 = vadd.xlane.f32.xlu1 %v1711_v23 }
 0x75b   :  { %v4252_v24 = vpop.f32.mrb[12].mxu0 }
 0x75c   :  { %v4254_v25 = vpop.f32.mrb[13].mxu0 }
 0x75d   :  { %v2337_v26 = vpop.f32.mrb[14].mxu0 }
 0x75e   :  { %v2338_v27 = vpop.f32.mrb[15].mxu0 }
 0x7af   :  { %v1709_v30 = vpop.xlane.xlu0 %1708 }
 0x7b0   :  { %v1715_v31 = vmul.f32 0.01, %v1709_v30  ;;  %v2997_v30 = vld [vmem:[#allocation3] ss:$0 sm:$0xff] }
 0x7b1   :  { %v1713_v32 = vpop.xlane.xlu1 %1712 }
 0x7b2   :  { %v1717_v35 = vsub.f32 %v1700_v19, %v1715_v31  ;;  %v1716_v36 = vmul.f32 0.01, %v1713_v32 }
 0x7b4   :  { %v1718_v39 = vsub.f32 %v1703_v21, %v1716_v36  ;;  %v1719_v40 = vmul.f32 %v1717_v35, %v1717_v35 }
 0x7b6   :  { %v1721_v41 = vsel %vm1706_vm8, %v1719_v40, 0.0  ;;  %v1720_v43 = vmul.f32 %v1718_v39, %v1718_v39 }
 0x7b7   :  { %1722 = vadd.xlane.f32.xlu0 %v1721_v41 }
 0x7b8   :  { %v1724_v47 = vsel %vm1710_vm9, %v1720_v43, 0.0 }
 0x7b9   :  { %1725 = vadd.xlane.f32.xlu1 %v1724_v47 }
 0x7bb   :  { %1456 = vadd.xlane.f32.xlu0 %v1455_v50 }
 0x7bd   :  { %1461 = vadd.xlane.f32.xlu1 %v1460_v51 }
 0x844   :  { %v1723_v52 = vpop.xlane.xlu0 %1722 }
 0x845   :  { %v1727_v20 = vmul.f32 0.01, %v1723_v52 }
 0x846   :  { %v1726_v53 = vpop.xlane.xlu1 %1725 }
 0x847   :  { %v1729_v54 = vadd.f32 1e-05, %v1727_v20  ;;  %v1728_v55 = vmul.f32 0.01, %v1726_v53  ;;  %v1492_v53 = vld [vmem:[%s4341_s16] sm:$0x3] }
 0x848   :  { %v1457_v0 = vpop.xlane.xlu0 %1456 }
 0x849   :  { %3578 = vrsqrt.f32 %v1729_v54  ;;  %v1730_v56 = vadd.f32 1e-05, %v1728_v55  ;;  %v1463_v5 = vmul.f32 0.004, %v1457_v0  ;;  %v1497_v55 = vrot.slane %v1492_v53, %v4112_v42 }
 0x84a   :  { %v1462_v3 = vpop.xlane.xlu1 %1461 }
 0x84b   :  { %3580 = vrsqrt.f32 %v1730_v56  ;;  %v1464_v6 = vmul.f32 0.004, %v1462_v3  ;;  %v1466_v7 = vsub.f32 %v1448_v34, %v1463_v5  ;;  %v1465_v10 = vsub.f32 %v1446_v46, %v1463_v5 }
 0x84c   :  { %v1501_v56 = vrot.slane %v1492_v53, %v4117_v44  ;;  %v3467_v53 = vld [vmem:[#allocation11 + $0xd0] ss:$8 sps:$4 sm:$0xff]  }
 0x84d   :  { %v1467_v8 = vsub.f32 %v1450_v37, %v1464_v6  ;;  %v1468_v9 = vsub.f32 %v1452_v38, %v1464_v6  ;;  %v1470_v12 = vmul.f32 %v1466_v7, %v1466_v7  ;;  %v1469_v18 = vmul.f32 %v1465_v10, %v1465_v10 }
 0x84f   :  { %v1471_v15 = vmul.f32 %v1467_v8, %v1467_v8  ;;  %v1472_v16 = vmul.f32 %v1468_v9, %v1468_v9  ;;  %v1473_v21 = vsel %vm397_vm1, %v1470_v12, 0.0 }
 0x850   :  { %v1474_v28 = vadd.f32 %v1473_v21, %v1469_v18 }
 0x851   :  { %v1477_v26 = vsel %vm1126_vm6, %v1471_v15, 0.0  ;;  %v1478_v27 = vsel %vm1128_vm7, %v1472_v16, 0.0 }
 0x852   :  { %v1479_v29 = vadd.f32 %v1478_v27, %v1477_v26  ;;  %v3428_v26 = vld [vmem:[#allocation11] ss:$8 sps:$4 sm:$0xff]   ;;  %v3433_v27 = vld [vmem:[#allocation11 + $0x14] ss:$8 sps:$4 sm:$0xff]  }
 0x853   :  { %v3579_v1 = vpop.eup %3578 }
 0x854   :  { %v1733_v58 = vmul.f32 %v3579_v1, %v1717_v35 }
 0x855   :  { %v3581_v59 = vpop.eup %3580 }
 0x856   :  { %v1742_v61 = vmul.f32 %v2994_v57, %v1733_v58  ;;  %v1734_v62 = vmul.f32 %v3581_v59, %v1718_v39  ;;  %v1508_v58 = vld [vmem:[%s4342_s17] sm:$0x3] }
 0x858   :  { %v1743_v63 = vmul.f32 %v2994_v57, %v1734_v62  ;;  %v1751_v2 = vadd.f32 %v2995_v60, %v1742_v61  ;;  %v1513_v61 = vrot.slane %v1508_v58, %v4112_v42  ;;  %v1517_v62 = vrot.slane %v1508_v58, %v4117_v44 }
 0x85a   :  { %3582 = vtanh.f32 %v1751_v2  ;;  %v1752_v4 = vadd.f32 %v2995_v60, %v1743_v63 }
 0x85c   :  { %3584 = vtanh.f32 %v1752_v4 }
 0x864   :  { %v3583_v13 = vpop.eup %3582 }
 0x865   :  { %v1762_v14 = vmul.f32 %v3583_v13, %v2996_v11 }
 0x866   :  { %v3585_v17 = vpop.eup %3584 }
 0x867   :  { %v1764_v19 = vsel %vm1706_vm8, %v1762_v14, 0.0  ;;  %v1763_v22 = vmul.f32 %v3585_v17, %v2996_v11 }
 0x868   :  { %1765 = vadd.xlane.f32.xlu0 %v1764_v19 }
 0x869   :  { %v1767_v23 = vsel %vm1710_vm9, %v1763_v22, 0.0  ;;  %v3430_v22 = vld [vmem:[#allocation11 + $0x4] ss:$8 sps:$4 sm:$0xff]  }
 0x86a   :  { %1768 = vadd.xlane.f32.xlu1 %v1767_v23  ;;  %v1791_v23 = vld [vmem:[%s4385_s4] sm:$0x7] }
 0x86c   :  { %1475 = vadd.xlane.f32.xlu0 %v1474_v28  ;;  %v3431_v28 = vld [vmem:[#allocation11 + $0x10] ss:$8 sps:$4 sm:$0xff]  }
 0x86e   :  { %1480 = vadd.xlane.f32.xlu1 %v1479_v29  ;;  %v3436_v29 = vld [vmem:[#allocation11 + $0x24] ss:$8 sps:$4 sm:$0xff]  }
 0x8f5   :  { %v1766_v31 = vpop.xlane.xlu0 %1765 }
 0x8f6   :  { %v1777_v32 = vadd.f32 %v2997_v30, %v1766_v31  ;;  %v3439_v31 = vld [vmem:[#allocation11 + $0x34] ss:$8 sps:$4 sm:$0xff]  }
 0x8f7   :  { %v1769_v33 = vpop.xlane.xlu1 %1768 }
 0x8f8   :  { %v1779_v34 = vsub.f32 0.0, %v1777_v32  ;;  %v1778_v35 = vadd.f32 %v2997_v30, %v1769_v33  ;;  %v3434_v30 = vld [vmem:[#allocation11 + $0x20] ss:$8 sps:$4 sm:$0xff]   ;;  %v3437_v32 = vld [vmem:[#allocation11 + $0x30] ss:$8 sps:$4 sm:$0xff]  }
 0x8f9   :  { %v1476_v47 = vpop.xlane.xlu0 %1475  ;;  %v3442_v33 = vld [vmem:[#allocation11 + $0x44] ss:$8 sps:$4 sm:$0xff]  }
 0x8fa   :  { %v1781_v36 = vmul.f32 1.442695, %v1779_v34  ;;  %v1780_v37 = vsub.f32 0.0, %v1778_v35  ;;  %v1482_v49 = vmul.f32 0.004, %v1476_v47 }
 0x8fb   :  { %v1481_v48 = vpop.xlane.xlu1 %1480  ;;  %v3440_v34 = vld [vmem:[#allocation11 + $0x40] ss:$8 sps:$4 sm:$0xff]   ;;  %v3445_v35 = vld [vmem:[#allocation11 + $0x54] ss:$8 sps:$4 sm:$0xff]   ;;  %v3460_v47 = vld [vmem:[#allocation11 + $0xa4] ss:$8 sps:$4 sm:$0xff]  }
 0x8fc   :  { %3586 = vpow2.f32 %v1781_v36  ;;  %v1783_v38 = vmul.f32 1.442695, %v1780_v37  ;;  %v1483_v50 = vmul.f32 0.004, %v1481_v48  ;;  %v1484_v51 = vadd.f32 1e-05, %v1482_v49 }
 0x8fd   :  { %v3443_v36 = vld [vmem:[#allocation11 + $0x50] ss:$8 sps:$4 sm:$0xff]   ;;  %v3448_v37 = vld [vmem:[#allocation11 + $0x64] ss:$8 sps:$4 sm:$0xff]   ;;  %v3458_v48 = vld [vmem:[#allocation11 + $0xa0] ss:$8 sps:$4 sm:$0xff]  }
 0x8fe   :  { %3588 = vpow2.f32 %v1783_v38  ;;  %v1485_v52 = vadd.f32 1e-05, %v1483_v50  ;;  %v3446_v38 = vld [vmem:[#allocation11 + $0x60] ss:$8 sps:$4 sm:$0xff]   ;;  %v3463_v49 = vld [vmem:[#allocation11 + $0xb4] ss:$8 sps:$4 sm:$0xff]  }
 0x8ff   :  { %v3461_v50 = vld [vmem:[#allocation11 + $0xb0] ss:$8 sps:$4 sm:$0xff]  }
 0x906   :  { %v3587_v39 = vpop.eup %3586 }
 0x907   :  { %v1785_v40 = vadd.f32 1.0, %v3587_v39  ;;  %v3451_v39 = vld [vmem:[#allocation11 + $0x74] ss:$8 sps:$4 sm:$0xff]  }
 0x908   :  { %v3589_v41 = vpop.eup %3588 }
 0x909   :  { %3590 = vrcp.f32 %v1785_v40  ;;  %v1786_v43 = vadd.f32 1.0, %v3589_v41  ;;  %v3449_v40 = vld [vmem:[#allocation11 + $0x70] ss:$8 sps:$4 sm:$0xff]   ;;  %v3454_v41 = vld [vmem:[#allocation11 + $0x84] ss:$8 sps:$4 sm:$0xff]  }
 0x90b   :  { %3592 = vrcp.f32 %v1786_v43  ;;  %v3452_v43 = vld [vmem:[#allocation11 + $0x80] ss:$8 sps:$4 sm:$0xff]  }
 0x90c   :  { %3594 = vrsqrt.f32 %v1484_v51  ;;  %v3466_v51 = vld [vmem:[#allocation11 + $0xc4] ss:$8 sps:$4 sm:$0xff]  }
 0x90d   :  { %3596 = vrsqrt.f32 %v1485_v52  ;;  %v3464_v52 = vld [vmem:[#allocation11 + $0xc0] ss:$8 sps:$4 sm:$0xff]  }
 0x913   :  { %v3591_v45 = vpop.eup %3590 }
 0x914   :  { %1794 = vperm.xlu0 %3168, %v3591_v45   ;;  %v3457_v45 = vld [vmem:[#allocation11 + $0x94] ss:$8 sps:$4 sm:$0xff]  }
 0x915   :  { %v3593_v46 = vpop.eup %3592 }
 0x916   :  { %1799 = vperm.xlu1 %3169, %v3593_v46   ;;  %v3595_v20 = vpop.eup %3594  ;;  %v3455_v46 = vld [vmem:[#allocation11 + $0x90] ss:$8 sps:$4 sm:$0xff]  }
 0x917   :  { %v3597_v54 = vpop.eup %3596  ;;  %v1488_v1 = vmul.f32 %v3595_v20, %v1465_v10  ;;  %v1489_v57 = vmul.f32 %v3595_v20, %v1466_v7  ;;  %v3469_v20 = vld [vmem:[#allocation11 + $0xd4] ss:$8 sps:$4 sm:$0xff]  }
 0x918   :  { %v1490_v59 = vmul.f32 %v3597_v54, %v1467_v8  ;;  %v1491_v60 = vmul.f32 %v3597_v54, %v1468_v9  ;;  %v3472_v54 = vld [vmem:[#allocation11 + $0xe4] ss:$8 sps:$4 sm:$0xff]  }
 0x919   :  { %v1504_v63 = vmul.f32 %v1497_v55, %v1488_v1  ;;  %v1505_v0 = vmul.f32 %v1501_v56, %v1489_v57  ;;  %v3475_v1 = vld [vmem:[#allocation11 + $0xf0] ss:$8 sps:$4 sm:$0x1f]   ;;  %v3481_v57 = vld [vmem:[#allocation12 + $0x104] ss:$8 sps:$4 sm:$0xff]  }
 0x91a   :  { %v1506_v2 = vmul.f32 %v1497_v55, %v1490_v59  ;;  %v1507_v3 = vmul.f32 %v1501_v56, %v1491_v60  ;;  %v3470_v55 = vld [vmem:[#allocation11 + $0xe0] ss:$8 sps:$4 sm:$0xff]   ;;  %v3473_v56 = vld [vmem:[#allocation11 + $0xf4] ss:$8 sps:$4 sm:$0x1f]   ;;  %v2087_v58 = vsel %vm401_vm2, %v3475_v1, 0  ;;  %2765 = vmatprep.subr.bf16.mxu0 %v3481_v57 }
 0x91b   :  { %v1520_v4 = vadd.f32 %v1513_v61, %v1504_v63  ;;  %v1521_v5 = vadd.f32 %v1517_v62, %v1505_v0  ;;  %v3479_v59 = vld [vmem:[#allocation12 + $0x100] ss:$8 sps:$4 sm:$0xff]   ;;  %v3478_v60 = vld [vmem:[#allocation12 + $0x4] ss:$8 sps:$4 sm:$0xff]   ;;  %v3520_v1 = vld [vmem:[#allocation12 + $0x74] ss:$8 sps:$4 sm:$0xff]  }
 0x91c   :  { %v1522_v6 = vadd.f32 %v1513_v61, %v1506_v2  ;;  %v1523_v11 = vadd.f32 %v1517_v62, %v1507_v3  ;;  %2766 = vmatpush1.bf16.msra.mxu0 %v3479_v59  ;;  %v3487_v61 = vld [vmem:[#allocation12 + $0x114] ss:$8 sps:$4 sm:$0xff]   ;;  %v3485_v62 = vld [vmem:[#allocation12 + $0x110] ss:$8 sps:$4 sm:$0xff]   ;;  %v3493_v63 = vld [vmem:[#allocation12 + $0x124] ss:$8 sps:$4 sm:$0xff]  }
 0x91d   :  { %v1524_v7 = vmax.f32 %v1520_v4, 0.0  ;;  %v1525_v12 = vmax.f32 %v1521_v5, 0.0  ;;  %2767 = vmatprep.subr.bf16.mxu0 %v3487_v61  ;;  %v3491_v0 = vld [vmem:[#allocation12 + $0x120] ss:$8 sps:$4 sm:$0xff]   ;;  %v3499_v2 = vld [vmem:[#allocation12 + $0x134] ss:$8 sps:$4 sm:$0xff]  }
 0x91e   :  { %v1526_v13 = vmax.f32 %v1522_v6, 0.0  ;;  %v1527_v14 = vmax.f32 %v1523_v11, 0.0  ;;  %v3497_v3 = vld [vmem:[#allocation12 + $0x130] ss:$8 sps:$4 sm:$0xff]   ;;  %v3505_v4 = vld [vmem:[#allocation12 + $0x144] ss:$8 sps:$4 sm:$0xff]  }
 0x91f   :  { %v3503_v5 = vld [vmem:[#allocation12 + $0x140] ss:$8 sps:$4 sm:$0xff]   ;;  %v3511_v6 = vld [vmem:[#allocation12 + $0x154] ss:$8 sps:$4 sm:$0xff]   ;;  %v3509_v11 = vld [vmem:[#allocation12 + $0x150] ss:$8 sps:$4 sm:$0xff]  }
 0x920   :  { %2768 = vmatpush1.bf16.msra.mxu0 %v3485_v62  ;;  %v3518_v57 = vld [vmem:[#allocation12 + $0x70] ss:$8 sps:$4 sm:$0xff]   ;;  %v3524_v59 = vld [vmem:[#allocation12 + $0x80] ss:$8 sps:$4 sm:$0xff]   ;;  %v3538_v62 = vld [vmem:[#allocation12 + $0xa4] ss:$8 sps:$4 sm:$0xff]  }
 0x921   :  { %2769 = vmatprep.subr.bf16.mxu0 %v3493_v63  ;;  %v3530_v61 = vld [vmem:[#allocation12 + $0x90] ss:$8 sps:$4 sm:$0xff]   ;;  %v3536_v63 = vld [vmem:[#allocation12 + $0xa0] ss:$8 sps:$4 sm:$0xff]  }
 0x924   :  { %2770 = vmatpush1.bf16.msra.mxu0 %v3491_v0  ;;  %v3544_v0 = vld [vmem:[#allocation12 + $0xb4] ss:$8 sps:$4 sm:$0xff]  }
 0x925   :  { %2771 = vmatprep.subr.bf16.mxu0 %v3499_v2  ;;  %v3542_v2 = vld [vmem:[#allocation12 + $0xb0] ss:$8 sps:$4 sm:$0xff]  }
 0x928   :  { %2772 = vmatpush1.bf16.msra.mxu0 %v3497_v3  ;;  %v3550_v3 = vld [vmem:[#allocation12 + $0xc4] ss:$8 sps:$4 sm:$0xff]  }
 0x929   :  { %2773 = vmatprep.subr.bf16.mxu0 %v3505_v4  ;;  %v3548_v4 = vld [vmem:[#allocation12 + $0xc0] ss:$8 sps:$4 sm:$0xff]  }
 0x92c   :  { %2774 = vmatpush1.bf16.msra.mxu0 %v3503_v5  ;;  %v3556_v5 = vld [vmem:[#allocation12 + $0xd4] ss:$8 sps:$4 sm:$0xff]  }
 0x92d   :  { %2775 = vmatprep.subr.bf16.mxu0 %v3511_v6  ;;  %v3554_v6 = vld [vmem:[#allocation12 + $0xd0] ss:$8 sps:$4 sm:$0xff]  }
 0x930   :  { %2776 = vmatpush1.bf16.msra.mxu0 %v3509_v11  ;;  %v3562_v11 = vld [vmem:[#allocation12 + $0xe4] ss:$8 sps:$4 sm:$0xff]  }
 0x993   :  { %v1795_v10 = vpop.permute.xlu0 %1794 }
 0x994   :  { %v1802_v8 = vmul.f32 %v1795_v10, %v1524_v7  ;;  %v1803_v9 = vmul.f32 %v1795_v10, %v1525_v12  ;;  %v3517_v10 = vld [vmem:[#allocation12 + $0x164] ss:$8 sps:$4 sm:$0xff]   ;;  %v3515_v7 = vld [vmem:[#allocation12 + $0x160] ss:$8 sps:$4 sm:$0xff]   ;;  %v3523_v12 = vld [vmem:[#allocation12 + $0x174] ss:$8 sps:$4 sm:$0xff]  }
 0x995   :  { %v1800_v15 = vpop.permute.xlu1 %1799  ;;  %2777 = vmatprep.subr.bf16.mxu0 %v3517_v10  ;;  %v3560_v10 = vld [vmem:[#allocation12 + $0xe0] ss:$8 sps:$4 sm:$0xff]  }
 0x996   :  { %v1804_v16 = vmul.f32 %v1800_v15, %v1526_v13  ;;  %v1805_v17 = vmul.f32 %v1800_v15, %v1527_v14  ;;  %2778 = vmatpush1.bf16.msra.mxu0 %v3515_v7  ;;  %v3521_v13 = vld [vmem:[#allocation12 + $0x170] ss:$8 sps:$4 sm:$0xff]   ;;  %v3529_v14 = vld [vmem:[#allocation12 + $0x184] ss:$8 sps:$4 sm:$0xff]   ;;  %v3527_v15 = vld [vmem:[#allocation12 + $0x180] ss:$8 sps:$4 sm:$0xff]  }
 0x997   :  { %2779 = vmatprep.subr.bf16.mxu0 %v3523_v12  ;;  %v3568_v7 = vld [vmem:[#allocation12 + $0xf4] ss:$8 sps:$4 sm:$0xff]   ;;  %v3566_v12 = vld [vmem:[#allocation12 + $0xf0] ss:$8 sps:$4 sm:$0xff]  }
 0x998   :  { %v1806_v18 = vpack.c.bf16 %v1804_v16, %v1802_v8  ;;  %v1807_v19 = vpack.c.bf16 %v1805_v17, %v1803_v9  ;;  %v3535_v8 = vld [vmem:[#allocation12 + $0x194] ss:$8 sps:$4 sm:$0xff]   ;;  %v3533_v9 = vld [vmem:[#allocation12 + $0x190] ss:$8 sps:$4 sm:$0xff]   ;;  %v3541_v16 = vld [vmem:[#allocation12 + $0x1a4] ss:$8 sps:$4 sm:$0xff]  }
 0x999   :  { %v3539_v17 = vld [vmem:[#allocation12 + $0x1a0] ss:$8 sps:$4 sm:$0xff]  }
 0x99a   :  { %2998 = vmatprep.subr.msk.bf16.mxu1 %vm449_vm3, %v1807_v19  ;;  %v1813_v21 = vsel %vm449_vm3, %v1806_v18, 0  ;;  %2780 = vmatpush1.bf16.msra.mxu0 %v3521_v13  ;;  %v3547_v18 = vld [vmem:[#allocation12 + $0x1b4] ss:$8 sps:$4 sm:$0xff]   ;;  %v3545_v19 = vld [vmem:[#allocation12 + $0x1b0] ss:$8 sps:$4 sm:$0xff]  }
 0x99b   :  { %1819 = vmatpush1.bf16.msra.mxu1 %v1813_v21  ;;  %2781 = vmatprep.subr.bf16.mxu0 %v3529_v14  ;;  %v3551_v21 = vld [vmem:[#allocation12 + $0x1c0] ss:$8 sps:$4 sm:$0xff]   ;;  %v183_v13 = vld [vmem:[%s4386_s7] sm:$0x3f] }
 0x99c   :  { %2092 = vmatprep.subr.bf16.mxu1 %v3430_v22  ;;  %v3553_v22 = vld [vmem:[#allocation12 + $0x1c4] ss:$8 sps:$4 sm:$0xff]   ;;  %v187_v14 = vpack.c.bf16 %v183_v13, %v183_v13 }
 0x99e   :  { %2999 = vmatmul.mubr.msk.bf16.vlgmr.msra.gmra.mrb[12].mxu1 %vm1808_vm10, %v1791_v23  ;;  %2782 = vmatpush1.bf16.msra.mxu0 %v3527_v15  ;;  %v3559_v23 = vld [vmem:[#allocation12 + $0x1d4] ss:$8 sps:$4 sm:$0xff]  }
 0x99f   :  { %2093 = vmatpush1.bf16.msra.mxu1 %v3428_v26  ;;  %2783 = vmatprep.subr.bf16.mxu0 %v3535_v8  ;;  %v3557_v26 = vld [vmem:[#allocation12 + $0x1d0] ss:$8 sps:$4 sm:$0xff]  }
 0x9a0   :  { %2094 = vmatprep.subr.bf16.mxu1 %v3433_v27  ;;  %v3565_v27 = vld [vmem:[#allocation12 + $0x1e4] ss:$8 sps:$4 sm:$0xff]  }
 0x9a2   :  { %2784 = vmatpush1.bf16.msra.mxu0 %v3533_v9 }
 0x9a3   :  { %2095 = vmatpush1.bf16.msra.mxu1 %v3431_v28  ;;  %2785 = vmatprep.subr.bf16.mxu0 %v3541_v16  ;;  %v3563_v28 = vld [vmem:[#allocation12 + $0x1e0] ss:$8 sps:$4 sm:$0xff]  }
 0x9a4   :  { %2096 = vmatprep.subr.bf16.mxu1 %v3436_v29  ;;  %v3571_v29 = vld [vmem:[#allocation12 + $0x1f4] ss:$8 sps:$4 sm:$0xff]  }
 0x9a6   :  { %2786 = vmatpush1.bf16.msra.mxu0 %v3539_v17 }
 0x9a7   :  { %2097 = vmatpush1.bf16.msra.mxu1 %v3434_v30  ;;  %2787 = vmatprep.subr.bf16.mxu0 %v3547_v18  ;;  %v3569_v30 = vld [vmem:[#allocation12 + $0x1f0] ss:$8 sps:$4 sm:$0xff]  }
 0x9a8   :  { %2098 = vmatprep.subr.bf16.mxu1 %v3439_v31  ;;  %v186_v31 = vld [vmem:[%s4386_s7 + $0x18] sm:$0x3f] }
 0x9aa   :  { %2788 = vmatpush1.bf16.msra.mxu0 %v3545_v19 }
 0x9ab   :  { %2099 = vmatpush1.bf16.msra.mxu1 %v3437_v32  ;;  %2789 = vmatprep.subr.bf16.mxu0 %v3553_v22  ;;  %v190_v32 = vpack.c.bf16 %v186_v31, %v186_v31 }
 0x9ac   :  { %2100 = vmatprep.subr.bf16.mxu1 %v3442_v33  ;;  %v185_v33 = vld [vmem:[%s4386_s7 + $0x10] sm:$0x3f] }
 0x9ad   :  { %2797 = vmatprep.mubr.bf16.mxu0 %v190_v32 }
 0x9ae   :  { %2790 = vmatpush1.bf16.msra.mxu0 %v3551_v21 }
 0x9af   :  { %2101 = vmatpush1.bf16.msra.mxu1 %v3440_v34  ;;  %2791 = vmatprep.subr.bf16.mxu0 %v3559_v23  ;;  %v189_v34 = vpack.c.bf16 %v185_v33, %v185_v33 }
 0x9b0   :  { %2102 = vmatprep.subr.bf16.mxu1 %v3445_v35  ;;  %v184_v35 = vld [vmem:[%s4386_s7 + $0x8] sm:$0x3f] }
 0x9b2   :  { %2792 = vmatpush1.bf16.msra.mxu0 %v3557_v26  ;;  %v2808_v26 = vld [vmem:[%s4352_s27] sm:$0x3] }
 0x9b3   :  { %2103 = vmatpush1.bf16.msra.mxu1 %v3443_v36  ;;  %2793 = vmatprep.subr.bf16.mxu0 %v3565_v27  ;;  %v2817_v32 = vrot.slane %v2808_v26, %v4117_v44 }
 0x9b4   :  { %2104 = vmatprep.subr.bf16.mxu1 %v3448_v37 }
 0x9b6   :  { %2794 = vmatpush1.bf16.msra.mxu0 %v3563_v28 }
 0x9b7   :  { %2105 = vmatpush1.bf16.msra.mxu1 %v3446_v38  ;;  %2795 = vmatprep.subr.bf16.mxu0 %v3571_v29  ;;  %v2813_v29 = vrot.slane %v2808_v26, %v4112_v42 }
 0x9b8   :  { %2106 = vmatprep.subr.bf16.mxu1 %v3451_v39 }
 0x9ba   :  { %2796 = vmatpush1.bf16.msra.mxu0 %v3569_v30 }
 0x9bb   :  { %2107 = vmatpush1.bf16.msra.mxu1 %v3449_v40  ;;  %v3476_v40 = vld [vmem:[#allocation12] ss:$8 sps:$4 sm:$0xff]  }
 0x9bc   :  { %2108 = vmatprep.subr.bf16.mxu1 %v3454_v41  ;;  %v188_v41 = vpack.c.bf16 %v184_v35, %v184_v35 }
 0x9bd   :  { %2798 = vmatmul.mubr.bf16.vlgmr.msra.gmra.mrb[16].mxu0 %v189_v34 }
 0x9bf   :  { %2109 = vmatpush1.bf16.msra.mxu1 %v3452_v43 }
 0x9c0   :  { %2110 = vmatprep.subr.bf16.mxu1 %v3457_v45 }
 0x9c3   :  { %2111 = vmatpush1.bf16.msra.mxu1 %v3455_v46  ;;  %v3484_v46 = vld [vmem:[#allocation12 + $0x14] ss:$8 sps:$4 sm:$0xff]  }
 0x9c4   :  { %2112 = vmatprep.subr.bf16.mxu1 %v3460_v47  ;;  %v3482_v47 = vld [vmem:[#allocation12 + $0x10] ss:$8 sps:$4 sm:$0xff]  }
 0x9c7   :  { %2113 = vmatpush1.bf16.msra.mxu1 %v3458_v48  ;;  %v3490_v48 = vld [vmem:[#allocation12 + $0x24] ss:$8 sps:$4 sm:$0xff]  }
 0x9c8   :  { %2114 = vmatprep.subr.bf16.mxu1 %v3463_v49  ;;  %v3488_v49 = vld [vmem:[#allocation12 + $0x20] ss:$8 sps:$4 sm:$0xff]  }
 0x9cb   :  { %2115 = vmatpush1.bf16.msra.mxu1 %v3461_v50  ;;  %v3496_v50 = vld [vmem:[#allocation12 + $0x34] ss:$8 sps:$4 sm:$0xff]  }
 0x9cc   :  { %2116 = vmatprep.subr.bf16.mxu1 %v3466_v51  ;;  %v3494_v51 = vld [vmem:[#allocation12 + $0x30] ss:$8 sps:$4 sm:$0xff]  }
 0x9cf   :  { %2117 = vmatpush1.bf16.msra.mxu1 %v3464_v52  ;;  %v3502_v52 = vld [vmem:[#allocation12 + $0x44] ss:$8 sps:$4 sm:$0xff]  }
 0x9d0   :  { %2118 = vmatprep.subr.bf16.mxu1 %v3469_v20  ;;  %v3500_v20 = vld [vmem:[#allocation12 + $0x40] ss:$8 sps:$4 sm:$0xff]  }
 0x9d3   :  { %2119 = vmatpush1.bf16.msra.mxu1 %v3467_v53  ;;  %v3508_v53 = vld [vmem:[#allocation12 + $0x54] ss:$8 sps:$4 sm:$0xff]  }
 0x9d4   :  { %2120 = vmatprep.subr.bf16.mxu1 %v3472_v54  ;;  %v3506_v54 = vld [vmem:[#allocation12 + $0x50] ss:$8 sps:$4 sm:$0xff]  }
 0x9d7   :  { %2121 = vmatpush1.bf16.msra.mxu1 %v3470_v55  ;;  %v3514_v55 = vld [vmem:[#allocation12 + $0x64] ss:$8 sps:$4 sm:$0xff]  }
 0x9d8   :  { %3032 = vmatprep.subr.msk.bf16.mxu1 %vm401_vm2, %v3473_v56  ;;  %v3512_v56 = vld [vmem:[#allocation12 + $0x60] ss:$8 sps:$4 sm:$0xff]  }
 0x9db   :  { %2123 = vmatpush1.bf16.msra.mxu1 %v2087_v58  ;;  %v3526_v58 = vld [vmem:[#allocation12 + $0x84] ss:$8 sps:$4 sm:$0xff]  }
 0x9dc   :  { %2724 = vmatprep.subr.bf16.mxu1 %v3478_v60  ;;  %v3532_v60 = vld [vmem:[#allocation12 + $0x94] ss:$8 sps:$4 sm:$0xff]  }
 0xa71   :  { %v1852_v36 = vpop.f32.mrb[12].mxu1 }
 0xa72   :  { %v1854_v37 = vpop.f32.mrb[13].mxu1  ;;  %v1891_v43 = vpack.c.bf16 %v1852_v36, %v1852_v36 }
 0xa73   :  { %v1892_v38 = vpack.c.bf16 %v1854_v37, %v1854_v37  ;;  %v1856_v39 = vpop.f32.mrb[14].mxu1 }
 0xa74   :  { %v1857_v45 = vpop.f32.mrb[15].mxu1 }
 0xa75   :  { %3033 = vmatprep.mubr.msk.bf16.mxu1 %vm397_vm1, %v1892_v38 }
 0xa76   :  { %2125 = vmatmul.mubr.bf16.vlgmr.msra.gmra.mrb[16].mxu1 %v1891_v43 }
 0xa77   :  { %2725 = vmatpush1.bf16.msra.mxu1 %v3476_v40  ;;  %2756 = vmatprep.mubr.bf16.mxu1 %v188_v41 }
 0xa78   :  { %2726 = vmatprep.subr.bf16.mxu1 %v3484_v46 }
 0xa7b   :  { %2727 = vmatpush1.bf16.msra.mxu1 %v3482_v47 }
 0xa7c   :  { %2728 = vmatprep.subr.bf16.mxu1 %v3490_v48 }
 0xa7f   :  { %2729 = vmatpush1.bf16.msra.mxu1 %v3488_v49 }
 0xa80   :  { %2730 = vmatprep.subr.bf16.mxu1 %v3496_v50 }
 0xa83   :  { %2731 = vmatpush1.bf16.msra.mxu1 %v3494_v51 }
 0xa84   :  { %2732 = vmatprep.subr.bf16.mxu1 %v3502_v52 }
 0xa87   :  { %2733 = vmatpush1.bf16.msra.mxu1 %v3500_v20 }
 0xa88   :  { %2734 = vmatprep.subr.bf16.mxu1 %v3508_v53 }
 0xa8b   :  { %2735 = vmatpush1.bf16.msra.mxu1 %v3506_v54 }
 0xa8c   :  { %2736 = vmatprep.subr.bf16.mxu1 %v3514_v55 }
 0xa8f   :  { %2737 = vmatpush1.bf16.msra.mxu1 %v3512_v56 }
 0xa90   :  { %2738 = vmatprep.subr.bf16.mxu1 %v3520_v1  ;;  %v2799_v15 = vpop.f32.mrb[16].mxu0 }
 0xa91   :  { %v2801_v8 = vpop.f32.mrb[17].mxu0 }
 0xa92   :  { %v2803_v9 = vpop.f32.mrb[18].mxu0 }
 0xa93   :  { %2739 = vmatpush1.bf16.msra.mxu1 %v3518_v57  ;;  %v2804_v16 = vpop.f32.mrb[19].mxu0 }
 0xa94   :  { %2740 = vmatprep.subr.bf16.mxu1 %v3526_v58 }
 0xa97   :  { %2741 = vmatpush1.bf16.msra.mxu1 %v3524_v59 }
 0xa98   :  { %2742 = vmatprep.subr.bf16.mxu1 %v3532_v60 }
 0xa9b   :  { %2743 = vmatpush1.bf16.msra.mxu1 %v3530_v61 }
 0xa9c   :  { %2744 = vmatprep.subr.bf16.mxu1 %v3538_v62 }
 0xa9f   :  { %2745 = vmatpush1.bf16.msra.mxu1 %v3536_v63 }
 0xaa0   :  { %2746 = vmatprep.subr.bf16.mxu1 %v3544_v0 }
 0xaa3   :  { %2747 = vmatpush1.bf16.msra.mxu1 %v3542_v2 }
 0xaa4   :  { %2748 = vmatprep.subr.bf16.mxu1 %v3550_v3 }
 0xaa7   :  { %2749 = vmatpush1.bf16.msra.mxu1 %v3548_v4 }
 0xaa8   :  { %2750 = vmatprep.subr.bf16.mxu1 %v3556_v5 }
 0xaab   :  { %2751 = vmatpush1.bf16.msra.mxu1 %v3554_v6 }
 0xaac   :  { %2752 = vmatprep.subr.bf16.mxu1 %v3562_v11 }
 0xaaf   :  { %2753 = vmatpush1.bf16.msra.mxu1 %v3560_v10 }
 0xab0   :  { %2754 = vmatprep.subr.bf16.mxu1 %v3568_v7 }
 0xab3   :  { %2755 = vmatpush1.bf16.msra.mxu1 %v3566_v12 }
 0xab6   :  { %2757 = vmatmul.mubr.bf16.vlgmr.msra.gmra.mrb[20].mxu1 %v187_v14 }
 0xb49   :  { %v2126_v17 = vpop.f32.mrb[16].mxu1 }
 0xb4a   :  { %v2334_v18 = vadd.f32 %v4252_v24, %v2126_v17  ;;  %v2128_v19 = vpop.f32.mrb[17].mxu1 }
 0xb4b   :  { %v2336_v22 = vadd.f32 %v4254_v25, %v2128_v19  ;;  %v2130_v21 = vpop.f32.mrb[18].mxu1 }
 0xb4c   :  { %v2131_v23 = vpop.f32.mrb[19].mxu1 }
 0xb89   :  { %v2758_v27 = vpop.f32.mrb[20].mxu1 }
 0xb8a   :  { %v2800_v28 = vadd.f32 %v2799_v15, %v2758_v27  ;;  %v2760_v30 = vpop.f32.mrb[21].mxu1 }
 0xb8b   :  { %v2802_v31 = vadd.f32 %v2801_v8, %v2760_v30  ;;  %v2762_v33 = vpop.f32.mrb[22].mxu1 }
 0xb8c   :  { %v2806_v34 = vadd.f32 %v2800_v28, %v2334_v18  ;;  %v2763_v24 = vpop.f32.mrb[23].mxu1 }
 0xb8d   :  { %v2807_v35 = vadd.f32 %v2802_v31, %v2336_v22 }
 0xb8e   :  { %v2820_v36 = vadd.f32 %v2813_v29, %v2806_v34 }
 0xb8f   :  { %v2821_v25 = vadd.f32 %v2817_v32, %v2807_v35 }
 0xb90   :  { %2822 = vst [vmem:[#allocation2] sm:$0x3f] %v2820_v36  ;;  %2824 = vst [vmem:[%s4387_s18] sm:$0x3f] %v2820_v36 }
 0xb91   :  { %2823 = vst.msk [vmem:[#allocation2 + $0x8] sm:$0x3f] %vm181_vm0, %v2821_v25  ;;  %2825 = vst.msk [vmem:[%s4387_s18 + $0x8] sm:$0x3f] %vm181_vm0, %v2821_v25 }
 0xb92   :  { %2830 = vsyncpa [#allocation5], 1 }
 0xb93   :  { %2831 = vsyncpa [#allocation7], 1 }
 0xb94   :  { %2832 = vsyncpa [#allocation10], 1 }
 0xb95   :  { %2833 = vsyncpa [#allocation13], 1 }

</bundles_post_ra>
